<compile_context>
chip_gen: v5e
topology: v5e:2x2
jax: 0.10.0
libtpu: 0.0.40
codegen_flags: <defaults>
</compile_context>

<pallas_src>
import jax
import jax.numpy as jnp
from jax.experimental import pallas as pl
from jax.experimental.pallas import tpu as pltpu

# ----------------------------- configuration --------------------------------
BATCH = 2
N_POINTS = 128
CHANNELS = 3
IMG_HW = 16
PATCH = 4
N_PATCHES = (IMG_HW // PATCH) ** 2          # 16 patches per image
K_RAW = CHANNELS * PATCH * PATCH            # 48 raw patch features
K_PAD = 128                                 # lane-dense padded patch features
WIDTH = 128                                 # synthetic "transformer width"
EMBED = 128                                 # output feature dim
TEMPERATURE = 0.07

BLOCK_ROWS = 8                              # image(B) + depth1(B) + depth2(B) + pad
BLOCK_K = 2 * K_PAD                         # 256: block-diag input features
BLOCK_W = 2 * WIDTH                         # 256: block-diag hidden width
BLOCK_E = 2 * EMBED                         # 256: block-diag output features


# ------------------------------ Pallas kernel --------------------------------
def _ntxent(za, zb, eye):
    """SimCLR NT-Xent (temperature 0.07) without materializing concat([za,zb]).

    Block-structured similarity (aa / ab / bb / ba) + shared-max log-sum-exp is
    mathematically identical to the full 2B x 2B masked-similarity version.
    All math stays f32 (the -1e9 mask and exp(sim/0.07) are not bf16-safe).
    """
    inv_t = 1.0 / TEMPERATURE
    za = za * jax.lax.rsqrt(jnp.sum(za * za, axis=-1, keepdims=True) + 1e-12)
    zb = zb * jax.lax.rsqrt(jnp.sum(zb * zb, axis=-1, keepdims=True) + 1e-12)

    contract = (((1,), (1,)), ((), ()))   # contract on feature axis (no .T)

    def dot_t(x, y):
        return jax.lax.dot_general(x, y, contract,
                                   preferred_element_type=jnp.float32)

    neg = jnp.float32(-1e9)
    saa = jnp.where(eye, neg, dot_t(za, za) * inv_t)   # mask self-similarity
    sbb = jnp.where(eye, neg, dot_t(zb, zb) * inv_t)
    sab = dot_t(za, zb) * inv_t
    sba = dot_t(zb, za) * inv_t

    pos = jnp.sum(za * zb, axis=-1, keepdims=True) * inv_t      # (n, 1)

    def lse2(s0, s1):
        # log-sum-exp over the virtual concatenation [s0 | s1] (per row).
        m = jnp.maximum(jnp.max(s0, axis=-1, keepdims=True),
                        jnp.max(s1, axis=-1, keepdims=True))
        return m + jnp.log(jnp.sum(jnp.exp(s0 - m), axis=-1, keepdims=True)
                           + jnp.sum(jnp.exp(s1 - m), axis=-1, keepdims=True))

    n = za.shape[0]
    loss_a = jnp.sum(lse2(saa, sab) - pos)
    loss_b = jnp.sum(lse2(sbb, sba) - pos)
    return (loss_a + loss_b) / (2.0 * n)


def clip2point_kernel(pooled_ref, w1_ref, lnp_ref, w2_ref, o_ref):
    """Fused: both towers (patch-embed -> LayerNorm -> projection) + NT-Xent.

    pooled: (8, 256) bf16  block-structured pooled patch features
            rows 0..B-1   : image tower (active cols [0,128))
            rows B..3B-1  : point tower, depth1 then depth2 (cols [128,256))
    w1:     (256, 256) bf16 block-diag [image_w1, point_w1]
    lnp:    (3, 8, 256) f32 packed [bias; gamma; beta], block-structured
            (zeros in each row's inactive half -> they re-zero the block).
    w2:     (256, 256) bf16 block-diag [image_w2, point_w2]
    o:      (2,) f32 in SMEM -> [image_loss, depth_loss]
    """
    # Block-diagonal patch embedding: (8,256)bf16 @ (256,256)bf16, f32 acc.
    h = jnp.dot(pooled_ref[...], w1_ref[...],
                preferred_element_type=jnp.float32)          # (8, 256) f32
    h = h + lnp_ref[0]                                       # block bias

    # LayerNorm over each row's ACTIVE 128 columns.  The inactive half of every
    # row is exactly zero, so sums over all 256 columns give the active sums;
    # the inactive columns' (0 - mu)^2 contribution is removed exactly by the
    # "- mu*mu" correction.  Kept in f32 (v5e VPU/EUP have no bf16 path).
    mu = jnp.sum(h, axis=-1, keepdims=True) * (1.0 / WIDTH)
    var = (jnp.sum((h - mu) ** 2, axis=-1, keepdims=True) * (1.0 / WIDTH)
           - mu * mu)
    hn = (h - mu) * jax.lax.rsqrt(var + 1e-5)
    hn = hn * lnp_ref[1] + lnp_ref[2]        # gamma/beta re-zero inactive half

    # Block-diagonal output projection.
    feats = jnp.dot(hn.astype(jnp.bfloat16), w2_ref[...],
                    preferred_element_type=jnp.float32)      # (8, 256) f32

    # Slice the per-tower feature blocks (image cols [0,128), point [128,256)).
    # image_feat corresponds to image_model(...).detach(): detach is a no-op
    # for the forward value (this script only evaluates the forward pass).
    image_feat = feats[0:BATCH, 0:EMBED]
    depth1 = feats[BATCH:2 * BATCH, EMBED:2 * EMBED]
    depth2 = feats[2 * BATCH:3 * BATCH, EMBED:2 * EMBED]
    depth_feat = (depth1 + depth2) * 0.5

    # Shared eye mask (built once, reused by both losses).
    eye = (jax.lax.broadcasted_iota(jnp.int32, (BATCH, BATCH), 0)
           == jax.lax.broadcasted_iota(jnp.int32, (BATCH, BATCH), 1))

    o_ref[0] = _ntxent(depth_feat, image_feat, eye)   # image_loss
    o_ref[1] = _ntxent(depth1, depth2, eye)           # depth_loss


# ------------------------------ plain-JAX glue --------------------------------
def pool_features(x_nchw):
    """NCHW -> (B, K_RAW) mean over the patch grid of flattened patches (f32).

    Exact fold of the patch-axis mean pool: the patch embed is affine, so
    mean_p(X @ W + b) == (mean_p X) @ W + b.
    """
    B, C, H, W = x_nchw.shape
    x = x_nchw.astype(jnp.float32).reshape(B, C, H // PATCH, PATCH,
                                           W // PATCH, PATCH)
    x = x.transpose(0, 2, 4, 1, 3, 5)        # B, Hp, Wp, C, p, p
    x = x.reshape(B, N_PATCHES, K_RAW)
    return jnp.mean(x, axis=1)               # (B, K_RAW)


def pseudo_render(points, a, e, d, H, W, n_aug=2):
    """Vectorized deterministic orthographic depth rasterizer (glue).

    Returns (B, n_aug, 3, H, W) float32 depth images, mimicking
    Renderer(points, a, e, d, 1, aug=True).
    """
    # TODO(synk): the real PyTorch3D-style differentiable point renderer
    # (point-radius splatting) and the Selector module have no clean Pallas
    # equivalent; this is a deterministic approximation.
    # TODO(synk): the one-hot min-reduce below is O(B*n_aug*N*H*W); at real
    # resolutions replace with a segment_min / Pallas scatter-min kernel.
    B, N, _ = points.shape
    j = jnp.arange(n_aug, dtype=jnp.float32)
    az = jnp.deg2rad(a[:, None] + 15.0 * j[None, :])             # (B, n_aug)
    el = jnp.deg2rad(e[:, None] + 10.0 * j[None, :])
    ca, sa = jnp.cos(az), jnp.sin(az)
    ce, se = jnp.cos(el), jnp.sin(el)
    zero, one = jnp.zeros_like(ca), jnp.ones_like(ca)
    Rz = jnp.stack([jnp.stack([ca, -sa, zero], -1),
                    jnp.stack([sa, ca, zero], -1),
                    jnp.stack([zero, zero, one], -1)], -2)       # (B,n_aug,3,3)
    Rx = jnp.stack([jnp.stack([one, zero, zero], -1),
                    jnp.stack([zero, ce, -se], -1),
                    jnp.stack([zero, se, ce], -1)], -2)
    R = jnp.matmul(Rx, Rz)                                       # (B,n_aug,3,3)
    p = jnp.einsum('bnc,bjdc->bjnd', points, R)                  # (B,n_aug,N,3)
    x, y, z = p[..., 0], p[..., 1], p[..., 2]
    px = jnp.clip(((x + 1.0) * 0.5 * (W - 1)).astype(jnp.int32), 0, W - 1)
    py = jnp.clip(((y + 1.0) * 0.5 * (H - 1)).astype(jnp.int32), 0, H - 1)
    dist = d[:, None, None]                                      # (B,1,1)
    depth = dist - z                                             # (B,n_aug,N)
    bg = dist + 2.0

    # Scatter-min via a vectorized one-hot min-reduce.
    pid = py * W + px                                            # (B,n_aug,N)
    pix = jnp.arange(H * W, dtype=jnp.int32)
    hit = pid[..., None] == pix                                  # (B,n_aug,N,HW)
    canvas = jnp.min(jnp.where(hit, depth[..., None], bg[..., None]), axis=2)
    canvas = jnp.where(canvas >= bg - 1e-3, 0.0,
                       1.0 - (canvas - (dist - 1.0)) / 2.0)      # (B,n_aug,HW)
    canvas = canvas.reshape(B, n_aug, 1, H, W)
    return jnp.broadcast_to(canvas, (B, n_aug, 3, H, W))


def make_visual_params(key):
    k1, k2 = jax.random.split(key)
    return {
        "w1": jax.random.normal(k1, (K_PAD, WIDTH), jnp.float32) * 0.05,
        "b1": jnp.zeros((1, WIDTH), jnp.float32),
        "gamma": jnp.ones((1, WIDTH), jnp.float32),
        "beta": jnp.zeros((1, WIDTH), jnp.float32),
        "w2": jax.random.normal(k2, (WIDTH, EMBED), jnp.float32) * 0.05,
    }


def _block_diag2(a, b):
    r, c = a.shape
    out = jnp.zeros((2 * r, 2 * c), jnp.float32)
    out = out.at[:r, :c].set(a)
    out = out.at[r:, c:].set(b)
    return out


def _row_block(img_vec, pt_vec):
    """(8, 256): image rows get img_vec in cols [0,W); point rows in [W,2W)."""
    out = jnp.zeros((BLOCK_ROWS, BLOCK_W), jnp.float32)
    out = out.at[0:BATCH, 0:WIDTH].set(jnp.broadcast_to(img_vec, (BATCH, WIDTH)))
    out = out.at[BATCH:3 * BATCH, WIDTH:2 * WIDTH].set(
        jnp.broadcast_to(pt_vec, (2 * BATCH, WIDTH)))
    return out


def clip2point_forward(params, points, images, a, e, d):
    """Mirror of CLIP2Point.forward -> (total, image_loss, depth_loss)."""
    # renderer(points, a, e, d, 1, aug=True, rot=False) -> (B, 2, C, H, W)
    depths = pseudo_render(points, a, e, d, IMG_HW, IMG_HW, n_aug=2)

    # Pooled patch features (exact patch-axis mean, folded out of the kernel).
    pooled_img = pool_features(images[:, 0])                     # (B, K_RAW)
    depth_cat = jnp.concatenate([depths[:, 0], depths[:, 1]], axis=0)
    pooled_depth = pool_features(depth_cat)                      # (2B, K_RAW)

    # Block-structured (8, 256) pooled-input slab, pre-cast to bf16.
    pooled_block = jnp.zeros((BLOCK_ROWS, BLOCK_K), jnp.float32)
    pooled_block = pooled_block.at[0:BATCH, 0:K_RAW].set(pooled_img)
    pooled_block = pooled_block.at[BATCH:3 * BATCH,
                                   K_PAD:K_PAD + K_RAW].set(pooled_depth)
    pooled_block = pooled_block.astype(jnp.bfloat16)

    im, pm = params["image_model"], params["point_model"]
    w1_block = _block_diag2(im["w1"], pm["w1"]).astype(jnp.bfloat16)
    w2_block = _block_diag2(im["w2"], pm["w2"]).astype(jnp.bfloat16)
    lnp_block = jnp.stack([_row_block(im["b1"], pm["b1"]),
                           _row_block(im["gamma"], pm["gamma"]),
                           _row_block(im["beta"], pm["beta"])], axis=0)

    losses = pl.pallas_call(
        clip2point_kernel,
        out_shape=jax.ShapeDtypeStruct((2,), jnp.float32),
        in_specs=[pl.BlockSpec(memory_space=pltpu.MemorySpace.VMEM)] * 4,
        out_specs=pl.BlockSpec(memory_space=pltpu.MemorySpace.SMEM),
    )(pooled_block, w1_block, lnp_block, w2_block)

    image_loss = losses[0]
    depth_loss = losses[1]
    w = params["weights"]
    total = image_loss + depth_loss / (w ** 2) + jnp.log(w + 1.0)
    return total, image_loss, depth_loss


# --------------------------------- main --------------------------------------
if __name__ == "__main__":
    root = jax.random.PRNGKey(0)
    k_pts, k_img, k_a, k_e, k_d, k_pm, k_im = jax.random.split(root, 7)

    points = jnp.tanh(jax.random.normal(k_pts, (BATCH, N_POINTS, 3), jnp.float32))
    images = jax.random.normal(k_img, (BATCH, 1, CHANNELS, IMG_HW, IMG_HW),
                               jnp.float32)
    a = jax.random.uniform(k_a, (BATCH,), jnp.float32, 0.0, 360.0)
    e = jax.random.uniform(k_e, (BATCH,), jnp.float32, 10.0, 40.0)
    d = jax.random.uniform(k_d, (BATCH,), jnp.float32, 1.5, 2.5)

    params = {
        "point_model": make_visual_params(k_pm),
        "image_model": make_visual_params(k_im),
        "weights": jnp.ones((), jnp.float32),   # nn.Parameter(torch.ones([]))
    }

    fwd = jax.jit(clip2point_forward)
    total, image_loss, depth_loss = fwd(params, points, images, a, e, d)
    jax.block_until_ready((total, image_loss, depth_loss))

    assert total.shape == () and image_loss.shape == () and depth_loss.shape == ()
    assert jnp.isfinite(total) and jnp.isfinite(image_loss) and jnp.isfinite(depth_loss)
    print("KERNEL_OK")
</pallas_src>

<mosaic_0001>
module attributes {stable_mosaic.version = 11 : i64} {
  func.func @clip2point_kernel(%arg0: memref<8x256xbf16, #tpu.memory_space<vmem>>, %arg1: memref<256x256xbf16, #tpu.memory_space<vmem>>, %arg2: memref<3x8x256xf32, #tpu.memory_space<vmem>>, %arg3: memref<256x256xbf16, #tpu.memory_space<vmem>>, %arg4: memref<2xf32, #tpu.memory_space<smem>>) attributes {dimension_semantics = [], scalar_prefetch = 0 : i64, scratch_operands = 0 : i64, tpu.core_type = #tpu.core_type<tc>} {
    %c0 = arith.constant 0 : index
    %c0_0 = arith.constant 0 : index
    %0 = vector.load %arg0[%c0, %c0_0] : memref<8x256xbf16, #tpu.memory_space<vmem>>, vector<8x256xbf16>
    %c0_1 = arith.constant 0 : index
    %c0_2 = arith.constant 0 : index
    %1 = vector.load %arg1[%c0_1, %c0_2] : memref<256x256xbf16, #tpu.memory_space<vmem>>, vector<256x256xbf16>
    %cst = arith.constant dense<0.000000e+00> : vector<8x256xf32>
    %2 = tpu.matmul %0, %1, %cst {dimension_numbers = #tpu.dot_dimension_numbers<[1], [0], [0], [1], [0, 0, 1, 1], [], []>} : vector<8x256xbf16>, vector<256x256xbf16>, vector<8x256xf32> -> vector<8x256xf32>
    %c0_3 = arith.constant 0 : index
    %c0_4 = arith.constant 0 : index
    %c0_5 = arith.constant 0 : index
    %3 = vector.load %arg2[%c0_3, %c0_4, %c0_5] : memref<3x8x256xf32, #tpu.memory_space<vmem>>, vector<1x8x256xf32>
    %4 = vector.shape_cast %3 : vector<1x8x256xf32> to vector<8x256xf32>
    %5 = arith.addf %2, %4 : vector<8x256xf32>
    %cst_6 = arith.constant dense<0.000000e+00> : vector<8xf32>
    %6 = vector.multi_reduction <add>, %5, %cst_6 [1] : vector<8x256xf32> to vector<8xf32>
    %7 = vector.shape_cast %6 : vector<8xf32> to vector<8x1xf32>
    %cst_7 = arith.constant 7.812500e-03 : f32
    %8 = vector.broadcast %cst_7 : f32 to vector<8x1xf32>
    %9 = arith.mulf %7, %8 : vector<8x1xf32>
    %10 = vector.broadcast %9 : vector<8x1xf32> to vector<8x256xf32>
    %11 = arith.subf %5, %10 : vector<8x256xf32>
    %12 = arith.mulf %11, %11 : vector<8x256xf32>
    %cst_8 = arith.constant dense<0.000000e+00> : vector<8xf32>
    %13 = vector.multi_reduction <add>, %12, %cst_8 [1] : vector<8x256xf32> to vector<8xf32>
    %14 = vector.shape_cast %13 : vector<8xf32> to vector<8x1xf32>
    %cst_9 = arith.constant 7.812500e-03 : f32
    %15 = vector.broadcast %cst_9 : f32 to vector<8x1xf32>
    %16 = arith.mulf %14, %15 : vector<8x1xf32>
    %17 = arith.mulf %9, %9 : vector<8x1xf32>
    %18 = arith.subf %16, %17 : vector<8x1xf32>
    %19 = vector.broadcast %9 : vector<8x1xf32> to vector<8x256xf32>
    %20 = arith.subf %5, %19 : vector<8x256xf32>
    %cst_10 = arith.constant 9.99999974E-6 : f32
    %21 = vector.broadcast %cst_10 : f32 to vector<8x1xf32>
    %22 = arith.addf %18, %21 : vector<8x1xf32>
    %23 = math.rsqrt %22 : vector<8x1xf32>
    %24 = vector.broadcast %23 : vector<8x1xf32> to vector<8x256xf32>
    %25 = arith.mulf %20, %24 : vector<8x256xf32>
    %c1 = arith.constant 1 : index
    %c0_11 = arith.constant 0 : index
    %c0_12 = arith.constant 0 : index
    %26 = vector.load %arg2[%c1, %c0_11, %c0_12] : memref<3x8x256xf32, #tpu.memory_space<vmem>>, vector<1x8x256xf32>
    %27 = vector.shape_cast %26 : vector<1x8x256xf32> to vector<8x256xf32>
    %28 = arith.mulf %25, %27 : vector<8x256xf32>
    %c2 = arith.constant 2 : index
    %c0_13 = arith.constant 0 : index
    %c0_14 = arith.constant 0 : index
    %29 = vector.load %arg2[%c2, %c0_13, %c0_14] : memref<3x8x256xf32, #tpu.memory_space<vmem>>, vector<1x8x256xf32>
    %30 = vector.shape_cast %29 : vector<1x8x256xf32> to vector<8x256xf32>
    %31 = arith.addf %28, %30 : vector<8x256xf32>
    %32 = arith.truncf %31 : vector<8x256xf32> to vector<8x256xbf16>
    %c0_15 = arith.constant 0 : index
    %c0_16 = arith.constant 0 : index
    %33 = vector.load %arg3[%c0_15, %c0_16] : memref<256x256xbf16, #tpu.memory_space<vmem>>, vector<256x256xbf16>
    %cst_17 = arith.constant dense<0.000000e+00> : vector<8x256xf32>
    %34 = tpu.matmul %32, %33, %cst_17 {dimension_numbers = #tpu.dot_dimension_numbers<[1], [0], [0], [1], [0, 0, 1, 1], [], []>} : vector<8x256xbf16>, vector<256x256xbf16>, vector<8x256xf32> -> vector<8x256xf32>
    %35 = vector.extract_strided_slice %34 {offsets = [0, 0], sizes = [2, 128], strides = [1, 1]} : vector<8x256xf32> to vector<2x128xf32>
    %36 = vector.extract_strided_slice %34 {offsets = [2, 128], sizes = [2, 128], strides = [1, 1]} : vector<8x256xf32> to vector<2x128xf32>
    %37 = vector.extract_strided_slice %34 {offsets = [4, 128], sizes = [2, 128], strides = [1, 1]} : vector<8x256xf32> to vector<2x128xf32>
    %38 = arith.addf %36, %37 : vector<2x128xf32>
    %cst_18 = arith.constant 5.000000e-01 : f32
    %39 = vector.broadcast %cst_18 : f32 to vector<2x128xf32>
    %40 = arith.mulf %38, %39 : vector<2x128xf32>
    %41 = tpu.iota {dimensions = array<i32: 0>} : vector<2x2xi32>
    %42 = tpu.iota {dimensions = array<i32: 1>} : vector<2x2xi32>
    %43 = arith.cmpi eq, %41, %42 : vector<2x2xi32>
    %44 = arith.mulf %40, %40 : vector<2x128xf32>
    %cst_19 = arith.constant dense<0.000000e+00> : vector<2xf32>
    %45 = vector.multi_reduction <add>, %44, %cst_19 [1] : vector<2x128xf32> to vector<2xf32>
    %46 = vector.shape_cast %45 : vector<2xf32> to vector<2x1xf32>
    %cst_20 = arith.constant 9.99999996E-13 : f32
    %47 = vector.broadcast %cst_20 : f32 to vector<2x1xf32>
    %48 = arith.addf %46, %47 : vector<2x1xf32>
    %49 = math.rsqrt %48 : vector<2x1xf32>
    %50 = vector.broadcast %49 : vector<2x1xf32> to vector<2x128xf32>
    %51 = arith.mulf %40, %50 : vector<2x128xf32>
    %52 = arith.mulf %35, %35 : vector<2x128xf32>
    %cst_21 = arith.constant dense<0.000000e+00> : vector<2xf32>
    %53 = vector.multi_reduction <add>, %52, %cst_21 [1] : vector<2x128xf32> to vector<2xf32>
    %54 = vector.shape_cast %53 : vector<2xf32> to vector<2x1xf32>
    %cst_22 = arith.constant 9.99999996E-13 : f32
    %55 = vector.broadcast %cst_22 : f32 to vector<2x1xf32>
    %56 = arith.addf %54, %55 : vector<2x1xf32>
    %57 = math.rsqrt %56 : vector<2x1xf32>
    %58 = vector.broadcast %57 : vector<2x1xf32> to vector<2x128xf32>
    %59 = arith.mulf %35, %58 : vector<2x128xf32>
    %cst_23 = arith.constant dense<0.000000e+00> : vector<2x2xf32>
    %60 = tpu.matmul %51, %51, %cst_23 {dimension_numbers = #tpu.dot_dimension_numbers<[1], [1], [0], [0], [0, 0, 1, 0], [], []>} : vector<2x128xf32>, vector<2x128xf32>, vector<2x2xf32> -> vector<2x2xf32>
    %cst_24 = arith.constant 14.2857141 : f32
    %61 = vector.broadcast %cst_24 : f32 to vector<2x2xf32>
    %62 = arith.mulf %60, %61 : vector<2x2xf32>
    %cst_25 = arith.constant -1.000000e+09 : f32
    %63 = vector.broadcast %cst_25 : f32 to vector<2x2xf32>
    %64 = arith.select %43, %63, %62 : vector<2x2xi1>, vector<2x2xf32>
    %cst_26 = arith.constant dense<0.000000e+00> : vector<2x2xf32>
    %65 = tpu.matmul %59, %59, %cst_26 {dimension_numbers = #tpu.dot_dimension_numbers<[1], [1], [0], [0], [0, 0, 1, 0], [], []>} : vector<2x128xf32>, vector<2x128xf32>, vector<2x2xf32> -> vector<2x2xf32>
    %cst_27 = arith.constant 14.2857141 : f32
    %66 = vector.broadcast %cst_27 : f32 to vector<2x2xf32>
    %67 = arith.mulf %65, %66 : vector<2x2xf32>
    %cst_28 = arith.constant -1.000000e+09 : f32
    %68 = vector.broadcast %cst_28 : f32 to vector<2x2xf32>
    %69 = arith.select %43, %68, %67 : vector<2x2xi1>, vector<2x2xf32>
    %cst_29 = arith.constant dense<0.000000e+00> : vector<2x2xf32>
    %70 = tpu.matmul %51, %59, %cst_29 {dimension_numbers = #tpu.dot_dimension_numbers<[1], [1], [0], [0], [0, 0, 1, 0], [], []>} : vector<2x128xf32>, vector<2x128xf32>, vector<2x2xf32> -> vector<2x2xf32>
    %cst_30 = arith.constant 14.2857141 : f32
    %71 = vector.broadcast %cst_30 : f32 to vector<2x2xf32>
    %72 = arith.mulf %70, %71 : vector<2x2xf32>
    %cst_31 = arith.constant dense<0.000000e+00> : vector<2x2xf32>
    %73 = tpu.matmul %59, %51, %cst_31 {dimension_numbers = #tpu.dot_dimension_numbers<[1], [1], [0], [0], [0, 0, 1, 0], [], []>} : vector<2x128xf32>, vector<2x128xf32>, vector<2x2xf32> -> vector<2x2xf32>
    %cst_32 = arith.constant 14.2857141 : f32
    %74 = vector.broadcast %cst_32 : f32 to vector<2x2xf32>
    %75 = arith.mulf %73, %74 : vector<2x2xf32>
    %76 = arith.mulf %51, %59 : vector<2x128xf32>
    %cst_33 = arith.constant dense<0.000000e+00> : vector<2xf32>
    %77 = vector.multi_reduction <add>, %76, %cst_33 [1] : vector<2x128xf32> to vector<2xf32>
    %78 = vector.shape_cast %77 : vector<2xf32> to vector<2x1xf32>
    %cst_34 = arith.constant 14.2857141 : f32
    %79 = vector.broadcast %cst_34 : f32 to vector<2x1xf32>
    %80 = arith.mulf %78, %79 : vector<2x1xf32>
    %cst_35 = arith.constant dense<0xFF800000> : vector<2xf32>
    %81 = vector.multi_reduction <maximumf>, %64, %cst_35 [1] : vector<2x2xf32> to vector<2xf32>
    %82 = vector.shape_cast %81 : vector<2xf32> to vector<2x1xf32>
    %cst_36 = arith.constant dense<0xFF800000> : vector<2xf32>
    %83 = vector.multi_reduction <maximumf>, %72, %cst_36 [1] : vector<2x2xf32> to vector<2xf32>
    %84 = vector.shape_cast %83 : vector<2xf32> to vector<2x1xf32>
    %85 = arith.maximumf %82, %84 : vector<2x1xf32>
    %86 = vector.broadcast %85 : vector<2x1xf32> to vector<2x2xf32>
    %87 = arith.subf %64, %86 : vector<2x2xf32>
    %88 = math.exp %87 : vector<2x2xf32>
    %cst_37 = arith.constant dense<0.000000e+00> : vector<2xf32>
    %89 = vector.multi_reduction <add>, %88, %cst_37 [1] : vector<2x2xf32> to vector<2xf32>
    %90 = vector.shape_cast %89 : vector<2xf32> to vector<2x1xf32>
    %91 = vector.broadcast %85 : vector<2x1xf32> to vector<2x2xf32>
    %92 = arith.subf %72, %91 : vector<2x2xf32>
    %93 = math.exp %92 : vector<2x2xf32>
    %cst_38 = arith.constant dense<0.000000e+00> : vector<2xf32>
    %94 = vector.multi_reduction <add>, %93, %cst_38 [1] : vector<2x2xf32> to vector<2xf32>
    %95 = vector.shape_cast %94 : vector<2xf32> to vector<2x1xf32>
    %96 = arith.addf %90, %95 : vector<2x1xf32>
    %97 = math.log %96 : vector<2x1xf32>
    %98 = arith.addf %85, %97 : vector<2x1xf32>
    %99 = arith.subf %98, %80 : vector<2x1xf32>
    %100 = vector.shape_cast %99 : vector<2x1xf32> to vector<1x2x1xf32>
    %cst_39 = arith.constant dense<0.000000e+00> : vector<1xf32>
    %101 = vector.multi_reduction <add>, %100, %cst_39 [1, 2] : vector<1x2x1xf32> to vector<1xf32>
    %102 = vector.shape_cast %101 : vector<1xf32> to vector<1x1x1xf32>
    %103 = vector.extract %102[0, 0, 0] : f32 from vector<1x1x1xf32>
    %cst_40 = arith.constant dense<0xFF800000> : vector<2xf32>
    %104 = vector.multi_reduction <maximumf>, %69, %cst_40 [1] : vector<2x2xf32> to vector<2xf32>
    %105 = vector.shape_cast %104 : vector<2xf32> to vector<2x1xf32>
    %cst_41 = arith.constant dense<0xFF800000> : vector<2xf32>
    %106 = vector.multi_reduction <maximumf>, %75, %cst_41 [1] : vector<2x2xf32> to vector<2xf32>
    %107 = vector.shape_cast %106 : vector<2xf32> to vector<2x1xf32>
    %108 = arith.maximumf %105, %107 : vector<2x1xf32>
    %109 = vector.broadcast %108 : vector<2x1xf32> to vector<2x2xf32>
    %110 = arith.subf %69, %109 : vector<2x2xf32>
    %111 = math.exp %110 : vector<2x2xf32>
    %cst_42 = arith.constant dense<0.000000e+00> : vector<2xf32>
    %112 = vector.multi_reduction <add>, %111, %cst_42 [1] : vector<2x2xf32> to vector<2xf32>
    %113 = vector.shape_cast %112 : vector<2xf32> to vector<2x1xf32>
    %114 = vector.broadcast %108 : vector<2x1xf32> to vector<2x2xf32>
    %115 = arith.subf %75, %114 : vector<2x2xf32>
    %116 = math.exp %115 : vector<2x2xf32>
    %cst_43 = arith.constant dense<0.000000e+00> : vector<2xf32>
    %117 = vector.multi_reduction <add>, %116, %cst_43 [1] : vector<2x2xf32> to vector<2xf32>
    %118 = vector.shape_cast %117 : vector<2xf32> to vector<2x1xf32>
    %119 = arith.addf %113, %118 : vector<2x1xf32>
    %120 = math.log %119 : vector<2x1xf32>
    %121 = arith.addf %108, %120 : vector<2x1xf32>
    %122 = arith.subf %121, %80 : vector<2x1xf32>
    %123 = vector.shape_cast %122 : vector<2x1xf32> to vector<1x2x1xf32>
    %cst_44 = arith.constant dense<0.000000e+00> : vector<1xf32>
    %124 = vector.multi_reduction <add>, %123, %cst_44 [1, 2] : vector<1x2x1xf32> to vector<1xf32>
    %125 = vector.shape_cast %124 : vector<1xf32> to vector<1x1x1xf32>
    %126 = vector.extract %125[0, 0, 0] : f32 from vector<1x1x1xf32>
    %127 = arith.addf %103, %126 : f32
    %cst_45 = arith.constant 4.000000e+00 : f32
    %128 = arith.divf %127, %cst_45 : f32
    %c0_46 = arith.constant 0 : index
    %129 = memref.load %arg4[%c0_46] : memref<2xf32, #tpu.memory_space<smem>>
    memref.store %128, %arg4[%c0_46] : memref<2xf32, #tpu.memory_space<smem>>
    %130 = arith.mulf %36, %36 : vector<2x128xf32>
    %cst_47 = arith.constant dense<0.000000e+00> : vector<2xf32>
    %131 = vector.multi_reduction <add>, %130, %cst_47 [1] : vector<2x128xf32> to vector<2xf32>
    %132 = vector.shape_cast %131 : vector<2xf32> to vector<2x1xf32>
    %cst_48 = arith.constant 9.99999996E-13 : f32
    %133 = vector.broadcast %cst_48 : f32 to vector<2x1xf32>
    %134 = arith.addf %132, %133 : vector<2x1xf32>
    %135 = math.rsqrt %134 : vector<2x1xf32>
    %136 = vector.broadcast %135 : vector<2x1xf32> to vector<2x128xf32>
    %137 = arith.mulf %36, %136 : vector<2x128xf32>
    %138 = arith.mulf %37, %37 : vector<2x128xf32>
    %cst_49 = arith.constant dense<0.000000e+00> : vector<2xf32>
    %139 = vector.multi_reduction <add>, %138, %cst_49 [1] : vector<2x128xf32> to vector<2xf32>
    %140 = vector.shape_cast %139 : vector<2xf32> to vector<2x1xf32>
    %cst_50 = arith.constant 9.99999996E-13 : f32
    %141 = vector.broadcast %cst_50 : f32 to vector<2x1xf32>
    %142 = arith.addf %140, %141 : vector<2x1xf32>
    %143 = math.rsqrt %142 : vector<2x1xf32>
    %144 = vector.broadcast %143 : vector<2x1xf32> to vector<2x128xf32>
    %145 = arith.mulf %37, %144 : vector<2x128xf32>
    %cst_51 = arith.constant dense<0.000000e+00> : vector<2x2xf32>
    %146 = tpu.matmul %137, %137, %cst_51 {dimension_numbers = #tpu.dot_dimension_numbers<[1], [1], [0], [0], [0, 0, 1, 0], [], []>} : vector<2x128xf32>, vector<2x128xf32>, vector<2x2xf32> -> vector<2x2xf32>
    %cst_52 = arith.constant 14.2857141 : f32
    %147 = vector.broadcast %cst_52 : f32 to vector<2x2xf32>
    %148 = arith.mulf %146, %147 : vector<2x2xf32>
    %cst_53 = arith.constant -1.000000e+09 : f32
    %149 = vector.broadcast %cst_53 : f32 to vector<2x2xf32>
    %150 = arith.select %43, %149, %148 : vector<2x2xi1>, vector<2x2xf32>
    %cst_54 = arith.constant dense<0.000000e+00> : vector<2x2xf32>
    %151 = tpu.matmul %145, %145, %cst_54 {dimension_numbers = #tpu.dot_dimension_numbers<[1], [1], [0], [0], [0, 0, 1, 0], [], []>} : vector<2x128xf32>, vector<2x128xf32>, vector<2x2xf32> -> vector<2x2xf32>
    %cst_55 = arith.constant 14.2857141 : f32
    %152 = vector.broadcast %cst_55 : f32 to vector<2x2xf32>
    %153 = arith.mulf %151, %152 : vector<2x2xf32>
    %cst_56 = arith.constant -1.000000e+09 : f32
    %154 = vector.broadcast %cst_56 : f32 to vector<2x2xf32>
    %155 = arith.select %43, %154, %153 : vector<2x2xi1>, vector<2x2xf32>
    %cst_57 = arith.constant dense<0.000000e+00> : vector<2x2xf32>
    %156 = tpu.matmul %137, %145, %cst_57 {dimension_numbers = #tpu.dot_dimension_numbers<[1], [1], [0], [0], [0, 0, 1, 0], [], []>} : vector<2x128xf32>, vector<2x128xf32>, vector<2x2xf32> -> vector<2x2xf32>
    %cst_58 = arith.constant 14.2857141 : f32
    %157 = vector.broadcast %cst_58 : f32 to vector<2x2xf32>
    %158 = arith.mulf %156, %157 : vector<2x2xf32>
    %cst_59 = arith.constant dense<0.000000e+00> : vector<2x2xf32>
    %159 = tpu.matmul %145, %137, %cst_59 {dimension_numbers = #tpu.dot_dimension_numbers<[1], [1], [0], [0], [0, 0, 1, 0], [], []>} : vector<2x128xf32>, vector<2x128xf32>, vector<2x2xf32> -> vector<2x2xf32>
    %cst_60 = arith.constant 14.2857141 : f32
    %160 = vector.broadcast %cst_60 : f32 to vector<2x2xf32>
    %161 = arith.mulf %159, %160 : vector<2x2xf32>
    %162 = arith.mulf %137, %145 : vector<2x128xf32>
    %cst_61 = arith.constant dense<0.000000e+00> : vector<2xf32>
    %163 = vector.multi_reduction <add>, %162, %cst_61 [1] : vector<2x128xf32> to vector<2xf32>
    %164 = vector.shape_cast %163 : vector<2xf32> to vector<2x1xf32>
    %cst_62 = arith.constant 14.2857141 : f32
    %165 = vector.broadcast %cst_62 : f32 to vector<2x1xf32>
    %166 = arith.mulf %164, %165 : vector<2x1xf32>
    %cst_63 = arith.constant dense<0xFF800000> : vector<2xf32>
    %167 = vector.multi_reduction <maximumf>, %150, %cst_63 [1] : vector<2x2xf32> to vector<2xf32>
    %168 = vector.shape_cast %167 : vector<2xf32> to vector<2x1xf32>
    %cst_64 = arith.constant dense<0xFF800000> : vector<2xf32>
    %169 = vector.multi_reduction <maximumf>, %158, %cst_64 [1] : vector<2x2xf32> to vector<2xf32>
    %170 = vector.shape_cast %169 : vector<2xf32> to vector<2x1xf32>
    %171 = arith.maximumf %168, %170 : vector<2x1xf32>
    %172 = vector.broadcast %171 : vector<2x1xf32> to vector<2x2xf32>
    %173 = arith.subf %150, %172 : vector<2x2xf32>
    %174 = math.exp %173 : vector<2x2xf32>
    %cst_65 = arith.constant dense<0.000000e+00> : vector<2xf32>
    %175 = vector.multi_reduction <add>, %174, %cst_65 [1] : vector<2x2xf32> to vector<2xf32>
    %176 = vector.shape_cast %175 : vector<2xf32> to vector<2x1xf32>
    %177 = vector.broadcast %171 : vector<2x1xf32> to vector<2x2xf32>
    %178 = arith.subf %158, %177 : vector<2x2xf32>
    %179 = math.exp %178 : vector<2x2xf32>
    %cst_66 = arith.constant dense<0.000000e+00> : vector<2xf32>
    %180 = vector.multi_reduction <add>, %179, %cst_66 [1] : vector<2x2xf32> to vector<2xf32>
    %181 = vector.shape_cast %180 : vector<2xf32> to vector<2x1xf32>
    %182 = arith.addf %176, %181 : vector<2x1xf32>
    %183 = math.log %182 : vector<2x1xf32>
    %184 = arith.addf %171, %183 : vector<2x1xf32>
    %185 = arith.subf %184, %166 : vector<2x1xf32>
    %186 = vector.shape_cast %185 : vector<2x1xf32> to vector<1x2x1xf32>
    %cst_67 = arith.constant dense<0.000000e+00> : vector<1xf32>
    %187 = vector.multi_reduction <add>, %186, %cst_67 [1, 2] : vector<1x2x1xf32> to vector<1xf32>
    %188 = vector.shape_cast %187 : vector<1xf32> to vector<1x1x1xf32>
    %189 = vector.extract %188[0, 0, 0] : f32 from vector<1x1x1xf32>
    %cst_68 = arith.constant dense<0xFF800000> : vector<2xf32>
    %190 = vector.multi_reduction <maximumf>, %155, %cst_68 [1] : vector<2x2xf32> to vector<2xf32>
    %191 = vector.shape_cast %190 : vector<2xf32> to vector<2x1xf32>
    %cst_69 = arith.constant dense<0xFF800000> : vector<2xf32>
    %192 = vector.multi_reduction <maximumf>, %161, %cst_69 [1] : vector<2x2xf32> to vector<2xf32>
    %193 = vector.shape_cast %192 : vector<2xf32> to vector<2x1xf32>
    %194 = arith.maximumf %191, %193 : vector<2x1xf32>
    %195 = vector.broadcast %194 : vector<2x1xf32> to vector<2x2xf32>
    %196 = arith.subf %155, %195 : vector<2x2xf32>
    %197 = math.exp %196 : vector<2x2xf32>
    %cst_70 = arith.constant dense<0.000000e+00> : vector<2xf32>
    %198 = vector.multi_reduction <add>, %197, %cst_70 [1] : vector<2x2xf32> to vector<2xf32>
    %199 = vector.shape_cast %198 : vector<2xf32> to vector<2x1xf32>
    %200 = vector.broadcast %194 : vector<2x1xf32> to vector<2x2xf32>
    %201 = arith.subf %161, %200 : vector<2x2xf32>
    %202 = math.exp %201 : vector<2x2xf32>
    %cst_71 = arith.constant dense<0.000000e+00> : vector<2xf32>
    %203 = vector.multi_reduction <add>, %202, %cst_71 [1] : vector<2x2xf32> to vector<2xf32>
    %204 = vector.shape_cast %203 : vector<2xf32> to vector<2x1xf32>
    %205 = arith.addf %199, %204 : vector<2x1xf32>
    %206 = math.log %205 : vector<2x1xf32>
    %207 = arith.addf %194, %206 : vector<2x1xf32>
    %208 = arith.subf %207, %166 : vector<2x1xf32>
    %209 = vector.shape_cast %208 : vector<2x1xf32> to vector<1x2x1xf32>
    %cst_72 = arith.constant dense<0.000000e+00> : vector<1xf32>
    %210 = vector.multi_reduction <add>, %209, %cst_72 [1, 2] : vector<1x2x1xf32> to vector<1xf32>
    %211 = vector.shape_cast %210 : vector<1xf32> to vector<1x1x1xf32>
    %212 = vector.extract %211[0, 0, 0] : f32 from vector<1x1x1xf32>
    %213 = arith.addf %189, %212 : f32
    %cst_73 = arith.constant 4.000000e+00 : f32
    %214 = arith.divf %213, %cst_73 : f32
    %c1_74 = arith.constant 1 : index
    %215 = memref.load %arg4[%c1_74] : memref<2xf32, #tpu.memory_space<smem>>
    memref.store %214, %arg4[%c1_74] : memref<2xf32, #tpu.memory_space<smem>>
    return
  }
}

</mosaic_0001>

<bundles_post_ra>
// kernel: squeeze.11
= control target key start
LH: loop header
LB: loop body
LE: loop exit
PB: predicated region body
PF: predicated region fallthrough
CT: control target
= control target key end

     0   :  { %s1122_s12 = smov 124   ;;  %vm3_vm0 = vcmask 31744   ;;  %s1124_s2 = smov 116   ;;  %s1575_s0 = inlined_call_operand.vmem [shape: f32[2,1,3,16,16], index: 0, kind: input, shape index: {}]   ;;  %s1576_s1 = inlined_call_operand.vmem [shape: f32[2,3,4,4,4,4], index: 1, kind: output, shape index: {}]  }
   0x1   :  { %v994_v0 = vld [vmem:[%s1575_s0 + $0x20] sm:$0xff]   ;;  %v992_v1 = vld [vmem:[%s1575_s0 + $0x10] sm:$0xff]   ;;  %v995_v3 = vld [vmem:[%s1575_s0 + $0x28] sm:$0xff]  }
   0x2   :  { %v83_v2 = vld [vmem:[%s1575_s0] sm:$0xff]   ;;  %120 = vrot.lane.b32.xlu2 %v994_v0, %s1122_s12  ;;  %102 = vrot.lane.b32.xlu1 %v992_v1, %s1122_s12  ;;  %v993_v4 = vld [vmem:[%s1575_s0 + $0x18] sm:$0xff]   ;;  %33 = vst.msk [vmem:[#allocation0 + $0x100] ss:$8 sm:$0xf0] %vm3_vm0, %v994_v0  }
   0x3   :  { %84 = vrot.lane.b32.xlu0 %v83_v2, %s1122_s12  ;;  %v991_v5 = vld [vmem:[%s1575_s0 + $0x8] sm:$0xff]   ;;  %v998_v6 = vld [vmem:[%s1575_s0 + $0x40] sm:$0xff]   ;;  %v997_v7 = vld [vmem:[%s1575_s0 + $0x38] sm:$0xff]   ;;  %31 = vst.msk [vmem:[#allocation0 + $0x100] ss:$8 sm:$0xf] %vm3_vm0, %v994_v0  }
   0x4   :  { %v996_v8 = vld [vmem:[%s1575_s0 + $0x30] sm:$0xff]   ;;  %v1001_v9 = vld [vmem:[%s1575_s0 + $0x58] sm:$0xff]   ;;  %v999_v11 = vld [vmem:[%s1575_s0 + $0x48] sm:$0xff]   ;;  %38 = vst.msk [vmem:[#allocation0 + $0x140] ss:$8 sm:$0xf] %vm3_vm0, %v995_v3  }
   0x5   :  { %v1000_v10 = vld [vmem:[%s1575_s0 + $0x50] sm:$0xff]   ;;  %s1123_s0 = smov 120   ;;  %40 = vst.msk [vmem:[#allocation0 + $0x140] ss:$8 sm:$0xf0] %vm3_vm0, %v995_v3  }
   0x6   :  { %59 = vst.msk [vmem:[#allocation0 + $0x200] ss:$8 sm:$0xf] %vm3_vm0, %v998_v6  }
   0x7   :  { %61 = vst.msk [vmem:[#allocation0 + $0x200] ss:$8 sm:$0xf0] %vm3_vm0, %v998_v6  }
   0x8   :  { %17 = vst.msk [vmem:[#allocation0 + $0x80] ss:$8 sm:$0xf] %vm3_vm0, %v992_v1  }
   0x9   :  { %19 = vst.msk [vmem:[#allocation0 + $0x80] ss:$8 sm:$0xf0] %vm3_vm0, %v992_v1  }
   0xa   :  { %129 = vrot.lane.b32.xlu2 %v995_v3, %s1122_s12  ;;  %111 = vrot.lane.b32.xlu1 %v993_v4, %s1122_s12  ;;  %80 = vst.msk [vmem:[#allocation0 + $0x2c0] ss:$8 sm:$0xf] %vm3_vm0, %v1001_v9  }
   0xb   :  { %93 = vrot.lane.b32.xlu0 %v991_v5, %s1122_s12  ;;  %82 = vst.msk [vmem:[#allocation0 + $0x2c0] ss:$8 sm:$0xf0] %vm3_vm0, %v1001_v9  }
   0xc   :  { %10 = vst.msk [vmem:[#allocation0 + $0x40] ss:$8 sm:$0xf] %vm3_vm0, %v991_v5  }
   0xd   :  { %12 = vst.msk [vmem:[#allocation0 + $0x40] ss:$8 sm:$0xf0] %vm3_vm0, %v991_v5  }
   0xe   :  { %4 = vst.msk [vmem:[#allocation0] ss:$8 sm:$0xf] %vm3_vm0, %v83_v2  }
   0xf   :  { %5 = vst.msk [vmem:[#allocation0] ss:$8 sm:$0xf0] %vm3_vm0, %v83_v2  }
  0x10   :  { %24 = vst.msk [vmem:[#allocation0 + $0xc0] ss:$8 sm:$0xf] %vm3_vm0, %v993_v4  }
  0x11   :  { %26 = vst.msk [vmem:[#allocation0 + $0xc0] ss:$8 sm:$0xf0] %vm3_vm0, %v993_v4  }
  0x12   :  { %156 = vrot.lane.b32.xlu2 %v998_v6, %s1122_s12  ;;  %147 = vrot.lane.b32.xlu1 %v997_v7, %s1122_s12  ;;  %52 = vst.msk [vmem:[#allocation0 + $0x1c0] ss:$8 sm:$0xf] %vm3_vm0, %v997_v7  }
  0x13   :  { %138 = vrot.lane.b32.xlu0 %v996_v8, %s1122_s12  ;;  %54 = vst.msk [vmem:[#allocation0 + $0x1c0] ss:$8 sm:$0xf0] %vm3_vm0, %v997_v7  }
  0x14   :  { %45 = vst.msk [vmem:[#allocation0 + $0x180] ss:$8 sm:$0xf] %vm3_vm0, %v996_v8  }
  0x15   :  { %47 = vst.msk [vmem:[#allocation0 + $0x180] ss:$8 sm:$0xf0] %vm3_vm0, %v996_v8  }
  0x16   :  { %73 = vst.msk [vmem:[#allocation0 + $0x280] ss:$8 sm:$0xf] %vm3_vm0, %v1000_v10  }
  0x17   :  { %75 = vst.msk [vmem:[#allocation0 + $0x280] ss:$8 sm:$0xf0] %vm3_vm0, %v1000_v10  }
  0x18   :  { %66 = vst.msk [vmem:[#allocation0 + $0x240] ss:$8 sm:$0xf] %vm3_vm0, %v999_v11  }
  0x19   :  { %68 = vst.msk [vmem:[#allocation0 + $0x240] ss:$8 sm:$0xf0] %vm3_vm0, %v999_v11  }
  0x1a   :  { %183 = vrot.lane.b32.xlu2 %v1001_v9, %s1122_s12  ;;  %174 = vrot.lane.b32.xlu1 %v1000_v10, %s1122_s12 }
  0x1b   :  { %165 = vrot.lane.b32.xlu0 %v999_v11, %s1122_s12 }
  0x22   :  { %209 = vrot.lane.b32.xlu2 %v992_v1, %s1123_s0  ;;  %200 = vrot.lane.b32.xlu1 %v991_v5, %s1123_s0 }
  0x23   :  { %191 = vrot.lane.b32.xlu0 %v83_v2, %s1123_s0 }
  0x2a   :  { %236 = vrot.lane.b32.xlu2 %v995_v3, %s1123_s0  ;;  %227 = vrot.lane.b32.xlu1 %v994_v0, %s1123_s0 }
  0x2b   :  { %218 = vrot.lane.b32.xlu0 %v993_v4, %s1123_s0 }
  0x32   :  { %263 = vrot.lane.b32.xlu2 %v998_v6, %s1123_s0  ;;  %254 = vrot.lane.b32.xlu1 %v997_v7, %s1123_s0 }
  0x33   :  { %245 = vrot.lane.b32.xlu0 %v996_v8, %s1123_s0 }
  0x3a   :  { %290 = vrot.lane.b32.xlu2 %v1001_v9, %s1123_s0  ;;  %281 = vrot.lane.b32.xlu1 %v1000_v10, %s1123_s0 }
  0x3b   :  { %272 = vrot.lane.b32.xlu0 %v999_v11, %s1123_s0 }
  0x42   :  { %316 = vrot.lane.b32.xlu2 %v992_v1, %s1124_s2  ;;  %307 = vrot.lane.b32.xlu1 %v991_v5, %s1124_s2 }
  0x43   :  { %298 = vrot.lane.b32.xlu0 %v83_v2, %s1124_s2 }
  0x4a   :  { %343 = vrot.lane.b32.xlu2 %v995_v3, %s1124_s2  ;;  %334 = vrot.lane.b32.xlu1 %v994_v0, %s1124_s2 }
  0x4b   :  { %325 = vrot.lane.b32.xlu0 %v993_v4, %s1124_s2 }
  0x52   :  { %370 = vrot.lane.b32.xlu2 %v998_v6, %s1124_s2  ;;  %361 = vrot.lane.b32.xlu1 %v997_v7, %s1124_s2 }
  0x53   :  { %352 = vrot.lane.b32.xlu0 %v996_v8, %s1124_s2 }
  0x5a   :  { %397 = vrot.lane.b32.xlu2 %v1001_v9, %s1124_s2  ;;  %388 = vrot.lane.b32.xlu1 %v1000_v10, %s1124_s2 }
  0x5b   :  { %379 = vrot.lane.b32.xlu0 %v999_v11, %s1124_s2 }
  0x5c   :  { %v121_v12 = vpop.permute.xlu2 %120  }
  0x5d   :  { %124 = vst.msk [vmem:[#allocation0 + $0x101] ss:$8 sm:$0xf] %vm3_vm0, %v121_v12  }
  0x5e   :  { %126 = vst.msk [vmem:[#allocation0 + $0x101] ss:$8 sm:$0xf0] %vm3_vm0, %v121_v12  }
  0x64   :  { %v130_v13 = vpop.permute.xlu2 %129  }
  0x65   :  { %133 = vst.msk [vmem:[#allocation0 + $0x141] ss:$8 sm:$0xf] %vm3_vm0, %v130_v13  }
  0x66   :  { %135 = vst.msk [vmem:[#allocation0 + $0x141] ss:$8 sm:$0xf0] %vm3_vm0, %v130_v13  }
  0x6c   :  { %v157_v14 = vpop.permute.xlu2 %156  }
  0x6d   :  { %160 = vst.msk [vmem:[#allocation0 + $0x201] ss:$8 sm:$0xf] %vm3_vm0, %v157_v14  }
  0x6e   :  { %162 = vst.msk [vmem:[#allocation0 + $0x201] ss:$8 sm:$0xf0] %vm3_vm0, %v157_v14  }
  0x74   :  { %v184_v15 = vpop.permute.xlu2 %183   ;;  %v103_v16 = vpop.permute.xlu1 %102  }
  0x75   :  { %187 = vst.msk [vmem:[#allocation0 + $0x2c1] ss:$8 sm:$0xf] %vm3_vm0, %v184_v15   ;;  %v85_v17 = vpop.permute.xlu0 %84  }
  0x76   :  { %189 = vst.msk [vmem:[#allocation0 + $0x2c1] ss:$8 sm:$0xf0] %vm3_vm0, %v184_v15  }
  0x77   :  { %106 = vst.msk [vmem:[#allocation0 + $0x81] ss:$8 sm:$0xf] %vm3_vm0, %v103_v16  }
  0x78   :  { %108 = vst.msk [vmem:[#allocation0 + $0x81] ss:$8 sm:$0xf0] %vm3_vm0, %v103_v16  }
  0x79   :  { %88 = vst.msk [vmem:[#allocation0 + $0x1] ss:$8 sm:$0xf] %vm3_vm0, %v85_v17  }
  0x7a   :  { %90 = vst.msk [vmem:[#allocation0 + $0x1] ss:$8 sm:$0xf0] %vm3_vm0, %v85_v17  }
  0x7c   :  { %v210_v18 = vpop.permute.xlu2 %209   ;;  %v112_v19 = vpop.permute.xlu1 %111  }
  0x7d   :  { %213 = vst.msk [vmem:[#allocation0 + $0x82] ss:$8 sm:$0xf] %vm3_vm0, %v210_v18   ;;  %v94_v20 = vpop.permute.xlu0 %93  }
  0x7e   :  { %215 = vst.msk [vmem:[#allocation0 + $0x82] ss:$8 sm:$0xf0] %vm3_vm0, %v210_v18  }
  0x7f   :  { %115 = vst.msk [vmem:[#allocation0 + $0xc1] ss:$8 sm:$0xf] %vm3_vm0, %v112_v19  }
  0x80   :  { %117 = vst.msk [vmem:[#allocation0 + $0xc1] ss:$8 sm:$0xf0] %vm3_vm0, %v112_v19  }
  0x81   :  { %97 = vst.msk [vmem:[#allocation0 + $0x41] ss:$8 sm:$0xf] %vm3_vm0, %v94_v20  }
  0x82   :  { %99 = vst.msk [vmem:[#allocation0 + $0x41] ss:$8 sm:$0xf0] %vm3_vm0, %v94_v20  }
  0x84   :  { %v237_v21 = vpop.permute.xlu2 %236   ;;  %v148_v22 = vpop.permute.xlu1 %147  }
  0x85   :  { %240 = vst.msk [vmem:[#allocation0 + $0x142] ss:$8 sm:$0xf] %vm3_vm0, %v237_v21   ;;  %v139_v23 = vpop.permute.xlu0 %138  }
  0x86   :  { %242 = vst.msk [vmem:[#allocation0 + $0x142] ss:$8 sm:$0xf0] %vm3_vm0, %v237_v21  }
  0x87   :  { %151 = vst.msk [vmem:[#allocation0 + $0x1c1] ss:$8 sm:$0xf] %vm3_vm0, %v148_v22  }
  0x88   :  { %153 = vst.msk [vmem:[#allocation0 + $0x1c1] ss:$8 sm:$0xf0] %vm3_vm0, %v148_v22  }
  0x89   :  { %142 = vst.msk [vmem:[#allocation0 + $0x181] ss:$8 sm:$0xf] %vm3_vm0, %v139_v23  }
  0x8a   :  { %144 = vst.msk [vmem:[#allocation0 + $0x181] ss:$8 sm:$0xf0] %vm3_vm0, %v139_v23  }
  0x8c   :  { %v264_v24 = vpop.permute.xlu2 %263   ;;  %v175_v25 = vpop.permute.xlu1 %174  }
  0x8d   :  { %267 = vst.msk [vmem:[#allocation0 + $0x202] ss:$8 sm:$0xf] %vm3_vm0, %v264_v24   ;;  %v166_v26 = vpop.permute.xlu0 %165  }
  0x8e   :  { %269 = vst.msk [vmem:[#allocation0 + $0x202] ss:$8 sm:$0xf0] %vm3_vm0, %v264_v24  }
  0x8f   :  { %178 = vst.msk [vmem:[#allocation0 + $0x281] ss:$8 sm:$0xf] %vm3_vm0, %v175_v25  }
  0x90   :  { %180 = vst.msk [vmem:[#allocation0 + $0x281] ss:$8 sm:$0xf0] %vm3_vm0, %v175_v25  }
  0x91   :  { %169 = vst.msk [vmem:[#allocation0 + $0x241] ss:$8 sm:$0xf] %vm3_vm0, %v166_v26  }
  0x92   :  { %171 = vst.msk [vmem:[#allocation0 + $0x241] ss:$8 sm:$0xf0] %vm3_vm0, %v166_v26  }
  0x94   :  { %v291_v27 = vpop.permute.xlu2 %290   ;;  %v201_v28 = vpop.permute.xlu1 %200  }
  0x95   :  { %294 = vst.msk [vmem:[#allocation0 + $0x2c2] ss:$8 sm:$0xf] %vm3_vm0, %v291_v27   ;;  %v192_v29 = vpop.permute.xlu0 %191  }
  0x96   :  { %296 = vst.msk [vmem:[#allocation0 + $0x2c2] ss:$8 sm:$0xf0] %vm3_vm0, %v291_v27  }
  0x97   :  { %204 = vst.msk [vmem:[#allocation0 + $0x42] ss:$8 sm:$0xf] %vm3_vm0, %v201_v28  }
  0x98   :  { %206 = vst.msk [vmem:[#allocation0 + $0x42] ss:$8 sm:$0xf0] %vm3_vm0, %v201_v28  }
  0x99   :  { %195 = vst.msk [vmem:[#allocation0 + $0x2] ss:$8 sm:$0xf] %vm3_vm0, %v192_v29  }
  0x9a   :  { %197 = vst.msk [vmem:[#allocation0 + $0x2] ss:$8 sm:$0xf0] %vm3_vm0, %v192_v29  }
  0x9c   :  { %v317_v30 = vpop.permute.xlu2 %316   ;;  %v228_v31 = vpop.permute.xlu1 %227  }
  0x9d   :  { %320 = vst.msk [vmem:[#allocation0 + $0x83] ss:$8 sm:$0xf] %vm3_vm0, %v317_v30   ;;  %v219_v32 = vpop.permute.xlu0 %218  }
  0x9e   :  { %322 = vst.msk [vmem:[#allocation0 + $0x83] ss:$8 sm:$0xf0] %vm3_vm0, %v317_v30  }
  0x9f   :  { %231 = vst.msk [vmem:[#allocation0 + $0x102] ss:$8 sm:$0xf] %vm3_vm0, %v228_v31  }
  0xa0   :  { %233 = vst.msk [vmem:[#allocation0 + $0x102] ss:$8 sm:$0xf0] %vm3_vm0, %v228_v31  }
  0xa1   :  { %222 = vst.msk [vmem:[#allocation0 + $0xc2] ss:$8 sm:$0xf] %vm3_vm0, %v219_v32  }
  0xa2   :  { %224 = vst.msk [vmem:[#allocation0 + $0xc2] ss:$8 sm:$0xf0] %vm3_vm0, %v219_v32  }
  0xa4   :  { %v501_v33 = vld [vmem:[#allocation0 + $0x80] sm:$0xf]  ;;  %v507_v34 = vld [vmem:[#allocation0 + $0x88] sm:$0xf]  ;;  %v344_v35 = vpop.permute.xlu2 %343   ;;  %v255_v36 = vpop.permute.xlu1 %254   ;;  %v513_v37 = vld [vmem:[#allocation0 + $0x90] sm:$0xf] }
  0xa5   :  { %v246_v38 = vpop.permute.xlu0 %245   ;;  %v519_v39 = vld [vmem:[#allocation0 + $0x98] sm:$0xf]  ;;  %1039 = vst [vmem:[%s1576_s1 + $0x40] sm:$0xf] %v501_v33  ;;  %v525_v40 = vld [vmem:[#allocation0 + $0xa0] sm:$0xf] }
  0xa6   :  { %1040 = vst [vmem:[%s1576_s1 + $0x44] sm:$0xf] %v507_v34  ;;  %v531_v41 = vld [vmem:[#allocation0 + $0xa8] sm:$0xf]  ;;  %v537_v42 = vld [vmem:[#allocation0 + $0xb0] sm:$0xf] }
  0xa7   :  { %1041 = vst [vmem:[%s1576_s1 + $0x48] sm:$0xf] %v513_v37  ;;  %v543_v43 = vld [vmem:[#allocation0 + $0xb8] sm:$0xf] }
  0xa8   :  { %1042 = vst [vmem:[%s1576_s1 + $0x4c] sm:$0xf] %v519_v39 }
  0xa9   :  { %1043 = vst [vmem:[%s1576_s1 + $0x50] sm:$0xf] %v525_v40 }
  0xaa   :  { %1044 = vst [vmem:[%s1576_s1 + $0x54] sm:$0xf] %v531_v41 }
  0xab   :  { %1045 = vst [vmem:[%s1576_s1 + $0x58] sm:$0xf] %v537_v42 }
  0xac   :  { %v371_v44 = vpop.permute.xlu2 %370   ;;  %v282_v45 = vpop.permute.xlu1 %281   ;;  %1046 = vst [vmem:[%s1576_s1 + $0x5c] sm:$0xf] %v543_v43 }
  0xad   :  { %v273_v46 = vpop.permute.xlu0 %272   ;;  %347 = vst.msk [vmem:[#allocation0 + $0x143] ss:$8 sm:$0xf] %vm3_vm0, %v344_v35  }
  0xae   :  { %349 = vst.msk [vmem:[#allocation0 + $0x143] ss:$8 sm:$0xf0] %vm3_vm0, %v344_v35  }
  0xaf   :  { %258 = vst.msk [vmem:[#allocation0 + $0x1c2] ss:$8 sm:$0xf] %vm3_vm0, %v255_v36  }
  0xb0   :  { %260 = vst.msk [vmem:[#allocation0 + $0x1c2] ss:$8 sm:$0xf0] %vm3_vm0, %v255_v36  }
  0xb1   :  { %249 = vst.msk [vmem:[#allocation0 + $0x182] ss:$8 sm:$0xf] %vm3_vm0, %v246_v38  }
  0xb2   :  { %251 = vst.msk [vmem:[#allocation0 + $0x182] ss:$8 sm:$0xf0] %vm3_vm0, %v246_v38  }
  0xb3   :  { %374 = vst.msk [vmem:[#allocation0 + $0x203] ss:$8 sm:$0xf] %vm3_vm0, %v371_v44  }
  0xb4   :  { %v398_v47 = vpop.permute.xlu2 %397   ;;  %v308_v48 = vpop.permute.xlu1 %307   ;;  %v645_v49 = vld [vmem:[#allocation0 + $0x140] sm:$0xf]  ;;  %v651_v50 = vld [vmem:[#allocation0 + $0x148] sm:$0xf]  ;;  %v657_v51 = vld [vmem:[#allocation0 + $0x150] sm:$0xf] }
  0xb5   :  { %v663_v52 = vld [vmem:[#allocation0 + $0x158] sm:$0xf]  ;;  %1063 = vst [vmem:[%s1576_s1 + $0xa0] sm:$0xf] %v645_v49  ;;  %v669_v53 = vld [vmem:[#allocation0 + $0x160] sm:$0xf]  ;;  %v299_v57 = vpop.permute.xlu0 %298  }
  0xb6   :  { %1064 = vst [vmem:[%s1576_s1 + $0xa4] sm:$0xf] %v651_v50  ;;  %v675_v54 = vld [vmem:[#allocation0 + $0x168] sm:$0xf]  ;;  %v681_v55 = vld [vmem:[#allocation0 + $0x170] sm:$0xf] }
  0xb7   :  { %1065 = vst [vmem:[%s1576_s1 + $0xa8] sm:$0xf] %v657_v51  ;;  %v687_v56 = vld [vmem:[#allocation0 + $0x178] sm:$0xf] }
  0xb8   :  { %1066 = vst [vmem:[%s1576_s1 + $0xac] sm:$0xf] %v663_v52 }
  0xb9   :  { %1067 = vst [vmem:[%s1576_s1 + $0xb0] sm:$0xf] %v669_v53 }
  0xba   :  { %1068 = vst [vmem:[%s1576_s1 + $0xb4] sm:$0xf] %v675_v54  ;;  %v789_v58 = vld [vmem:[#allocation0 + $0x200] sm:$0xf]  ;;  %v795_v59 = vld [vmem:[#allocation0 + $0x208] sm:$0xf] }
  0xbb   :  { %1069 = vst [vmem:[%s1576_s1 + $0xb8] sm:$0xf] %v681_v55  ;;  %v801_v60 = vld [vmem:[#allocation0 + $0x210] sm:$0xf]  ;;  %v807_v61 = vld [vmem:[#allocation0 + $0x218] sm:$0xf] }
  0xbc   :  { %1070 = vst [vmem:[%s1576_s1 + $0xbc] sm:$0xf] %v687_v56  ;;  %v335_v2 = vpop.permute.xlu1 %334  }
  0xbd   :  { %376 = vst.msk [vmem:[#allocation0 + $0x203] ss:$8 sm:$0xf0] %vm3_vm0, %v371_v44   ;;  %v1334_v3 = vpop.permute.xlu0 %325  }
  0xbe   :  { %285 = vst.msk [vmem:[#allocation0 + $0x282] ss:$8 sm:$0xf] %vm3_vm0, %v282_v45  }
  0xbf   :  { %287 = vst.msk [vmem:[#allocation0 + $0x282] ss:$8 sm:$0xf0] %vm3_vm0, %v282_v45  }
  0xc0   :  { %1087 = vst [vmem:[%s1576_s1 + $0x100] sm:$0xf] %v789_v58 }
  0xc1   :  { %1088 = vst [vmem:[%s1576_s1 + $0x104] sm:$0xf] %v795_v59 }
  0xc2   :  { %1089 = vst [vmem:[%s1576_s1 + $0x108] sm:$0xf] %v801_v60 }
  0xc3   :  { %1090 = vst [vmem:[%s1576_s1 + $0x10c] sm:$0xf] %v807_v61 }
  0xc4   :  { %v813_v62 = vld [vmem:[#allocation0 + $0x220] sm:$0xf]  ;;  %v819_v63 = vld [vmem:[#allocation0 + $0x228] sm:$0xf]  ;;  %v825_v0 = vld [vmem:[#allocation0 + $0x230] sm:$0xf]  ;;  %v362_v19 = vpop.permute.xlu1 %361  }
  0xc5   :  { %v831_v1 = vld [vmem:[#allocation0 + $0x238] sm:$0xf]  ;;  %1091 = vst [vmem:[%s1576_s1 + $0x110] sm:$0xf] %v813_v62  ;;  %v353_v28 = vpop.permute.xlu0 %352  }
  0xc6   :  { %1092 = vst [vmem:[%s1576_s1 + $0x114] sm:$0xf] %v819_v63 }
  0xc7   :  { %1093 = vst [vmem:[%s1576_s1 + $0x118] sm:$0xf] %v825_v0 }
  0xc8   :  { %1094 = vst [vmem:[%s1576_s1 + $0x11c] sm:$0xf] %v831_v1 }
  0xc9   :  { %276 = vst.msk [vmem:[#allocation0 + $0x242] ss:$8 sm:$0xf] %vm3_vm0, %v273_v46  }
  0xca   :  { %278 = vst.msk [vmem:[#allocation0 + $0x242] ss:$8 sm:$0xf0] %vm3_vm0, %v273_v46  }
  0xcb   :  { %401 = vst.msk [vmem:[#allocation0 + $0x2c3] ss:$8 sm:$0xf] %vm3_vm0, %v398_v47  }
  0xcc   :  { %403 = vst.msk [vmem:[#allocation0 + $0x2c3] ss:$8 sm:$0xf0] %vm3_vm0, %v398_v47   ;;  %v389_v38 = vpop.permute.xlu1 %388  }
  0xcd   :  { %311 = vst.msk [vmem:[#allocation0 + $0x43] ss:$8 sm:$0xf] %vm3_vm0, %v308_v48   ;;  %v1443_v39 = vpop.permute.xlu0 %379  }
  0xce   :  { %313 = vst.msk [vmem:[#allocation0 + $0x43] ss:$8 sm:$0xf0] %vm3_vm0, %v308_v48  }
  0xcf   :  { %302 = vst.msk [vmem:[#allocation0 + $0x3] ss:$8 sm:$0xf] %vm3_vm0, %v299_v57  }
  0xd0   :  { %304 = vst.msk [vmem:[#allocation0 + $0x3] ss:$8 sm:$0xf0] %vm3_vm0, %v299_v57  }
  0xd1   :  { %338 = vst.msk [vmem:[#allocation0 + $0x103] ss:$8 sm:$0xf] %vm3_vm0, %v335_v2  }
  0xd2   :  { %v933_v4 = vld [vmem:[#allocation0 + $0x2c0] sm:$0xf]  ;;  %v939_v5 = vld [vmem:[#allocation0 + $0x2c8] sm:$0xf]  ;;  %v945_v6 = vld [vmem:[#allocation0 + $0x2d0] sm:$0xf] }
  0xd3   :  { %1111 = vst [vmem:[%s1576_s1 + $0x160] sm:$0xf] %v933_v4  ;;  %v951_v7 = vld [vmem:[#allocation0 + $0x2d8] sm:$0xf]  ;;  %v957_v8 = vld [vmem:[#allocation0 + $0x2e0] sm:$0xf] }
  0xd4   :  { %1112 = vst [vmem:[%s1576_s1 + $0x164] sm:$0xf] %v939_v5  ;;  %v963_v9 = vld [vmem:[#allocation0 + $0x2e8] sm:$0xf]  ;;  %v969_v10 = vld [vmem:[#allocation0 + $0x2f0] sm:$0xf] }
  0xd5   :  { %1113 = vst [vmem:[%s1576_s1 + $0x168] sm:$0xf] %v945_v6  ;;  %v975_v11 = vld [vmem:[#allocation0 + $0x2f8] sm:$0xf]  ;;  %v453_v12 = vld [vmem:[#allocation0 + $0x40] sm:$0xf] }
  0xd6   :  { %1114 = vst [vmem:[%s1576_s1 + $0x16c] sm:$0xf] %v951_v7  ;;  %v459_v13 = vld [vmem:[#allocation0 + $0x48] sm:$0xf]  ;;  %v465_v14 = vld [vmem:[#allocation0 + $0x50] sm:$0xf] }
  0xd7   :  { %1115 = vst [vmem:[%s1576_s1 + $0x170] sm:$0xf] %v957_v8  ;;  %v471_v15 = vld [vmem:[#allocation0 + $0x58] sm:$0xf]  ;;  %v477_v16 = vld [vmem:[#allocation0 + $0x60] sm:$0xf] }
  0xd8   :  { %1116 = vst [vmem:[%s1576_s1 + $0x174] sm:$0xf] %v963_v9  ;;  %v483_v17 = vld [vmem:[#allocation0 + $0x68] sm:$0xf]  ;;  %v489_v18 = vld [vmem:[#allocation0 + $0x70] sm:$0xf] }
  0xd9   :  { %1117 = vst [vmem:[%s1576_s1 + $0x178] sm:$0xf] %v969_v10  ;;  %v495_v20 = vld [vmem:[#allocation0 + $0x78] sm:$0xf]  ;;  %v406_v21 = vld [vmem:[#allocation0] sm:$0xf] }
  0xda   :  { %1118 = vst [vmem:[%s1576_s1 + $0x17c] sm:$0xf] %v975_v11  ;;  %v411_v22 = vld [vmem:[#allocation0 + $0x8] sm:$0xf]  ;;  %v417_v23 = vld [vmem:[#allocation0 + $0x10] sm:$0xf] }
  0xdb   :  { %1031 = vst [vmem:[%s1576_s1 + $0x20] sm:$0xf] %v453_v12  ;;  %v423_v24 = vld [vmem:[#allocation0 + $0x18] sm:$0xf]  ;;  %v429_v25 = vld [vmem:[#allocation0 + $0x20] sm:$0xf] }
  0xdc   :  { %1032 = vst [vmem:[%s1576_s1 + $0x24] sm:$0xf] %v459_v13  ;;  %v435_v26 = vld [vmem:[#allocation0 + $0x28] sm:$0xf]  ;;  %v441_v27 = vld [vmem:[#allocation0 + $0x30] sm:$0xf] }
  0xdd   :  { %1033 = vst [vmem:[%s1576_s1 + $0x28] sm:$0xf] %v465_v14  ;;  %v447_v29 = vld [vmem:[#allocation0 + $0x38] sm:$0xf]  ;;  %v597_v30 = vld [vmem:[#allocation0 + $0x100] sm:$0xf] }
  0xde   :  { %1034 = vst [vmem:[%s1576_s1 + $0x2c] sm:$0xf] %v471_v15  ;;  %v603_v31 = vld [vmem:[#allocation0 + $0x108] sm:$0xf]  ;;  %v609_v32 = vld [vmem:[#allocation0 + $0x110] sm:$0xf] }
  0xdf   :  { %1035 = vst [vmem:[%s1576_s1 + $0x30] sm:$0xf] %v477_v16  ;;  %v615_v33 = vld [vmem:[#allocation0 + $0x118] sm:$0xf] }
  0xe0   :  { %1036 = vst [vmem:[%s1576_s1 + $0x34] sm:$0xf] %v483_v17 }
  0xe1   :  { %1037 = vst [vmem:[%s1576_s1 + $0x38] sm:$0xf] %v489_v18 }
  0xe2   :  { %1038 = vst [vmem:[%s1576_s1 + $0x3c] sm:$0xf] %v495_v20 }
  0xe3   :  { %409 = vst [vmem:[%s1576_s1] sm:$0xf] %v406_v21 }
  0xe4   :  { %1024 = vst [vmem:[%s1576_s1 + $0x4] sm:$0xf] %v411_v22 }
  0xe5   :  { %1025 = vst [vmem:[%s1576_s1 + $0x8] sm:$0xf] %v417_v23 }
  0xe6   :  { %1026 = vst [vmem:[%s1576_s1 + $0xc] sm:$0xf] %v423_v24 }
  0xe7   :  { %1027 = vst [vmem:[%s1576_s1 + $0x10] sm:$0xf] %v429_v25 }
  0xe8   :  { %1028 = vst [vmem:[%s1576_s1 + $0x14] sm:$0xf] %v435_v26 }
  0xe9   :  { %1029 = vst [vmem:[%s1576_s1 + $0x18] sm:$0xf] %v441_v27 }
  0xea   :  { %1030 = vst [vmem:[%s1576_s1 + $0x1c] sm:$0xf] %v447_v29 }
  0xeb   :  { %340 = vst.msk [vmem:[#allocation0 + $0x103] ss:$8 sm:$0xf0] %vm3_vm0, %v335_v2  }
  0xec   :  { %1055 = vst [vmem:[%s1576_s1 + $0x80] sm:$0xf] %v597_v30 }
  0xed   :  { %1056 = vst [vmem:[%s1576_s1 + $0x84] sm:$0xf] %v603_v31 }
  0xee   :  { %1057 = vst [vmem:[%s1576_s1 + $0x88] sm:$0xf] %v609_v32 }
  0xef   :  { %1058 = vst [vmem:[%s1576_s1 + $0x8c] sm:$0xf] %v615_v33 }
  0xf0   :  { %329 = vst.msk [vmem:[#allocation0 + $0xc3] ss:$8 sm:$0xf] %vm3_vm0, %v1334_v3  }
  0xf1   :  { %331 = vst.msk [vmem:[#allocation0 + $0xc3] ss:$8 sm:$0xf0] %vm3_vm0, %v1334_v3  }
  0xf2   :  { %v621_v34 = vld [vmem:[#allocation0 + $0x120] sm:$0xf]  ;;  %v627_v35 = vld [vmem:[#allocation0 + $0x128] sm:$0xf]  ;;  %v633_v36 = vld [vmem:[#allocation0 + $0x130] sm:$0xf] }
  0xf3   :  { %v639_v37 = vld [vmem:[#allocation0 + $0x138] sm:$0xf]  ;;  %1059 = vst [vmem:[%s1576_s1 + $0x90] sm:$0xf] %v621_v34 }
  0xf4   :  { %1060 = vst [vmem:[%s1576_s1 + $0x94] sm:$0xf] %v627_v35 }
  0xf5   :  { %1061 = vst [vmem:[%s1576_s1 + $0x98] sm:$0xf] %v633_v36 }
  0xf6   :  { %1062 = vst [vmem:[%s1576_s1 + $0x9c] sm:$0xf] %v639_v37 }
  0xf7   :  { %v549_v40 = vld [vmem:[#allocation0 + $0xc0] sm:$0xf]  ;;  %v555_v41 = vld [vmem:[#allocation0 + $0xc8] sm:$0xf]  ;;  %v561_v42 = vld [vmem:[#allocation0 + $0xd0] sm:$0xf] }
  0xf8   :  { %1047 = vst [vmem:[%s1576_s1 + $0x60] sm:$0xf] %v549_v40  ;;  %v567_v43 = vld [vmem:[#allocation0 + $0xd8] sm:$0xf]  ;;  %v573_v44 = vld [vmem:[#allocation0 + $0xe0] sm:$0xf] }
  0xf9   :  { %1048 = vst [vmem:[%s1576_s1 + $0x64] sm:$0xf] %v555_v41  ;;  %v579_v45 = vld [vmem:[#allocation0 + $0xe8] sm:$0xf]  ;;  %v585_v46 = vld [vmem:[#allocation0 + $0xf0] sm:$0xf] }
  0xfa   :  { %1049 = vst [vmem:[%s1576_s1 + $0x68] sm:$0xf] %v561_v42  ;;  %v591_v47 = vld [vmem:[#allocation0 + $0xf8] sm:$0xf] }
  0xfb   :  { %1050 = vst [vmem:[%s1576_s1 + $0x6c] sm:$0xf] %v567_v43 }
  0xfc   :  { %1051 = vst [vmem:[%s1576_s1 + $0x70] sm:$0xf] %v573_v44 }
  0xfd   :  { %1052 = vst [vmem:[%s1576_s1 + $0x74] sm:$0xf] %v579_v45 }
  0xfe   :  { %1053 = vst [vmem:[%s1576_s1 + $0x78] sm:$0xf] %v585_v46 }
  0xff   :  { %1054 = vst [vmem:[%s1576_s1 + $0x7c] sm:$0xf] %v591_v47 }
 0x100   :  { %365 = vst.msk [vmem:[#allocation0 + $0x1c3] ss:$8 sm:$0xf] %vm3_vm0, %v362_v19  }
 0x101   :  { %367 = vst.msk [vmem:[#allocation0 + $0x1c3] ss:$8 sm:$0xf0] %vm3_vm0, %v362_v19  }
 0x102   :  { %356 = vst.msk [vmem:[#allocation0 + $0x183] ss:$8 sm:$0xf] %vm3_vm0, %v353_v28  }
 0x103   :  { %358 = vst.msk [vmem:[#allocation0 + $0x183] ss:$8 sm:$0xf0] %vm3_vm0, %v353_v28  }
 0x104   :  { %392 = vst.msk [vmem:[#allocation0 + $0x283] ss:$8 sm:$0xf] %vm3_vm0, %v389_v38  }
 0x105   :  { %394 = vst.msk [vmem:[#allocation0 + $0x283] ss:$8 sm:$0xf0] %vm3_vm0, %v389_v38  }
 0x106   :  { %383 = vst.msk [vmem:[#allocation0 + $0x243] ss:$8 sm:$0xf] %vm3_vm0, %v1443_v39  }
 0x107   :  { %v741_v48 = vld [vmem:[#allocation0 + $0x1c0] sm:$0xf]  ;;  %v747_v49 = vld [vmem:[#allocation0 + $0x1c8] sm:$0xf]  ;;  %v753_v50 = vld [vmem:[#allocation0 + $0x1d0] sm:$0xf] }
 0x108   :  { %1079 = vst [vmem:[%s1576_s1 + $0xe0] sm:$0xf] %v741_v48  ;;  %v759_v51 = vld [vmem:[#allocation0 + $0x1d8] sm:$0xf]  ;;  %v765_v52 = vld [vmem:[#allocation0 + $0x1e0] sm:$0xf] }
 0x109   :  { %1080 = vst [vmem:[%s1576_s1 + $0xe4] sm:$0xf] %v747_v49  ;;  %v771_v53 = vld [vmem:[#allocation0 + $0x1e8] sm:$0xf]  ;;  %v777_v54 = vld [vmem:[#allocation0 + $0x1f0] sm:$0xf] }
 0x10a   :  { %1081 = vst [vmem:[%s1576_s1 + $0xe8] sm:$0xf] %v753_v50  ;;  %v783_v55 = vld [vmem:[#allocation0 + $0x1f8] sm:$0xf]  ;;  %v693_v56 = vld [vmem:[#allocation0 + $0x180] sm:$0xf] }
 0x10b   :  { %1082 = vst [vmem:[%s1576_s1 + $0xec] sm:$0xf] %v759_v51  ;;  %v699_v57 = vld [vmem:[#allocation0 + $0x188] sm:$0xf]  ;;  %v705_v58 = vld [vmem:[#allocation0 + $0x190] sm:$0xf] }
 0x10c   :  { %1083 = vst [vmem:[%s1576_s1 + $0xf0] sm:$0xf] %v765_v52  ;;  %v711_v59 = vld [vmem:[#allocation0 + $0x198] sm:$0xf]  ;;  %v717_v60 = vld [vmem:[#allocation0 + $0x1a0] sm:$0xf] }
 0x10d   :  { %1084 = vst [vmem:[%s1576_s1 + $0xf4] sm:$0xf] %v771_v53  ;;  %v723_v61 = vld [vmem:[#allocation0 + $0x1a8] sm:$0xf]  ;;  %v729_v62 = vld [vmem:[#allocation0 + $0x1b0] sm:$0xf] }
 0x10e   :  { %1085 = vst [vmem:[%s1576_s1 + $0xf8] sm:$0xf] %v777_v54  ;;  %v735_v63 = vld [vmem:[#allocation0 + $0x1b8] sm:$0xf]  ;;  %v885_v0 = vld [vmem:[#allocation0 + $0x280] sm:$0xf] }
 0x10f   :  { %1086 = vst [vmem:[%s1576_s1 + $0xfc] sm:$0xf] %v783_v55  ;;  %v891_v1 = vld [vmem:[#allocation0 + $0x288] sm:$0xf]  ;;  %v897_v2 = vld [vmem:[#allocation0 + $0x290] sm:$0xf] }
 0x110   :  { %1071 = vst [vmem:[%s1576_s1 + $0xc0] sm:$0xf] %v693_v56  ;;  %v903_v3 = vld [vmem:[#allocation0 + $0x298] sm:$0xf]  ;;  %v909_v4 = vld [vmem:[#allocation0 + $0x2a0] sm:$0xf] }
 0x111   :  { %1072 = vst [vmem:[%s1576_s1 + $0xc4] sm:$0xf] %v699_v57  ;;  %v915_v5 = vld [vmem:[#allocation0 + $0x2a8] sm:$0xf]  ;;  %v921_v6 = vld [vmem:[#allocation0 + $0x2b0] sm:$0xf] }
 0x112   :  { %1073 = vst [vmem:[%s1576_s1 + $0xc8] sm:$0xf] %v705_v58  ;;  %v927_v7 = vld [vmem:[#allocation0 + $0x2b8] sm:$0xf]  ;;  %v837_v8 = vld [vmem:[#allocation0 + $0x240] sm:$0xf] }
 0x113   :  { %1074 = vst [vmem:[%s1576_s1 + $0xcc] sm:$0xf] %v711_v59  ;;  %v843_v9 = vld [vmem:[#allocation0 + $0x248] sm:$0xf]  ;;  %v849_v10 = vld [vmem:[#allocation0 + $0x250] sm:$0xf] }
 0x114   :  { %1075 = vst [vmem:[%s1576_s1 + $0xd0] sm:$0xf] %v717_v60  ;;  %v855_v11 = vld [vmem:[#allocation0 + $0x258] sm:$0xf] }
 0x115   :  { %1076 = vst [vmem:[%s1576_s1 + $0xd4] sm:$0xf] %v723_v61 }
 0x116   :  { %1077 = vst [vmem:[%s1576_s1 + $0xd8] sm:$0xf] %v729_v62 }
 0x117   :  { %1078 = vst [vmem:[%s1576_s1 + $0xdc] sm:$0xf] %v735_v63 }
 0x118   :  { %1103 = vst [vmem:[%s1576_s1 + $0x140] sm:$0xf] %v885_v0 }
 0x119   :  { %1104 = vst [vmem:[%s1576_s1 + $0x144] sm:$0xf] %v891_v1 }
 0x11a   :  { %1105 = vst [vmem:[%s1576_s1 + $0x148] sm:$0xf] %v897_v2 }
 0x11b   :  { %1106 = vst [vmem:[%s1576_s1 + $0x14c] sm:$0xf] %v903_v3 }
 0x11c   :  { %1107 = vst [vmem:[%s1576_s1 + $0x150] sm:$0xf] %v909_v4 }
 0x11d   :  { %1108 = vst [vmem:[%s1576_s1 + $0x154] sm:$0xf] %v915_v5 }
 0x11e   :  { %1109 = vst [vmem:[%s1576_s1 + $0x158] sm:$0xf] %v921_v6 }
 0x11f   :  { %1110 = vst [vmem:[%s1576_s1 + $0x15c] sm:$0xf] %v927_v7 }
 0x120   :  { %385 = vst.msk [vmem:[#allocation0 + $0x243] ss:$8 sm:$0xf0] %vm3_vm0, %v1443_v39  }
 0x121   :  { %1095 = vst [vmem:[%s1576_s1 + $0x120] sm:$0xf] %v837_v8 }
 0x122   :  { %1096 = vst [vmem:[%s1576_s1 + $0x124] sm:$0xf] %v843_v9 }
 0x123   :  { %1097 = vst [vmem:[%s1576_s1 + $0x128] sm:$0xf] %v849_v10 }
 0x124   :  { %1098 = vst [vmem:[%s1576_s1 + $0x12c] sm:$0xf] %v855_v11 }
 0x127   :  { %v861_v12 = vld [vmem:[#allocation0 + $0x260] sm:$0xf]  ;;  %v867_v13 = vld [vmem:[#allocation0 + $0x268] sm:$0xf]  ;;  %v873_v14 = vld [vmem:[#allocation0 + $0x270] sm:$0xf] }
 0x128   :  { %1099 = vst [vmem:[%s1576_s1 + $0x130] sm:$0xf] %v861_v12  ;;  %v879_v15 = vld [vmem:[#allocation0 + $0x278] sm:$0xf] }
 0x129   :  { %1100 = vst [vmem:[%s1576_s1 + $0x134] sm:$0xf] %v867_v13 }
 0x12a   :  { %1101 = vst [vmem:[%s1576_s1 + $0x138] sm:$0xf] %v873_v14 }
 0x12b   :  { %1102 = vst [vmem:[%s1576_s1 + $0x13c] sm:$0xf] %v879_v15 }

// kernel: clip2point_forward.1
= control target key start
LH: loop header
LB: loop body
LE: loop exit
PB: predicated region body
PF: predicated region fallthrough
CT: control target
= control target key end

     0   :  { %s1914_s0 = inlined_call_operand.vmem [shape: bf16[8,256], index: 0, kind: input, shape index: {}]   ;;  %s1915_s1 = inlined_call_operand.vmem [shape: bf16[256,256], index: 1, kind: input, shape index: {}]   ;;  %s1916_s2 = inlined_call_operand.vmem [shape: f32[3,8,256], index: 2, kind: input, shape index: {}]   ;;  %s1917_s3 = inlined_call_operand.vmem [shape: bf16[256,256], index: 3, kind: input, shape index: {}]   ;;  %s1918_s4 = inlined_call_operand.vmem [shape: f32[2], index: 4, kind: output, shape index: {}]  }
   0x1   :  { %v1068_v0 = vld [vmem:[%s1915_s1 + $0x70] sm:$0xf]  ;;  %v1285_v1 = vld [vmem:[%s1915_s1 + $0x74] sm:$0xf0]  ;;  %v1284_v5 = vld [vmem:[%s1915_s1 + $0x74] sm:$0xf] }
   0x2   :  { %v1132_v2 = vld [vmem:[%s1915_s1 + $0xf0] sm:$0xf]  ;;  %v1069_v3 = vor.u32 %v1285_v1, %v1068_v0  ;;  %v1301_v4 = vld [vmem:[%s1915_s1 + $0xf4] sm:$0xf0]  ;;  %v1070_v6 = vld [vmem:[%s1915_s1 + $0x78] sm:$0xf0] }
   0x3   :  { %v1133_v7 = vor.u32 %v1301_v4, %v1132_v2  ;;  %v1073_v8 = vor.u32 %v1284_v5, %v1070_v6  ;;  %v1300_v9 = vld [vmem:[%s1915_s1 + $0xf4] sm:$0xf]  ;;  %v1134_v10 = vld [vmem:[%s1915_s1 + $0xf8] sm:$0xf0]  ;;  %v1060_v11 = vld [vmem:[%s1915_s1 + $0x60] sm:$0xf] }
   0x4   :  { %220 = vmatpush.bf16.msra.mxu0 %v1069_v3  ;;  %v1137_v12 = vor.u32 %v1300_v9, %v1134_v10  ;;  %v1283_v13 = vld [vmem:[%s1915_s1 + $0x64] sm:$0xf0]  ;;  %v1124_v14 = vld [vmem:[%s1915_s1 + $0xe0] sm:$0xf]  ;;  %v1282_v18 = vld [vmem:[%s1915_s1 + $0x64] sm:$0xf] }
   0x5   :  { %v1299_v15 = vld [vmem:[%s1915_s1 + $0xe4] sm:$0xf0]  ;;  %233 = vmatpush.bf16.msra.mxu1 %v1133_v7  ;;  %246 = vmatpush.bf16.msra.mxu2 %v1073_v8  ;;  %v1061_v16 = vor.u32 %v1283_v13, %v1060_v11  ;;  %v1062_v19 = vld [vmem:[%s1915_s1 + $0x68] sm:$0xf0]  ;;  %v1298_v20 = vld [vmem:[%s1915_s1 + $0xe4] sm:$0xf] }
   0x6   :  { %v1125_v17 = vor.u32 %v1299_v15, %v1124_v14  ;;  %259 = vmatpush.bf16.msra.mxu3 %v1137_v12  ;;  %v1065_v21 = vor.u32 %v1282_v18, %v1062_v19  ;;  %v1126_v22 = vld [vmem:[%s1915_s1 + $0xe8] sm:$0xf0]  ;;  %v1052_v23 = vld [vmem:[%s1915_s1 + $0x50] sm:$0xf]  ;;  %v1281_v24 = vld [vmem:[%s1915_s1 + $0x54] sm:$0xf0] }
   0x7   :  { %v1129_v25 = vor.u32 %v1298_v20, %v1126_v22  ;;  %v1116_v26 = vld [vmem:[%s1915_s1 + $0xd0] sm:$0xf]  ;;  %v1297_v27 = vld [vmem:[%s1915_s1 + $0xd4] sm:$0xf0]  ;;  %v1280_v28 = vld [vmem:[%s1915_s1 + $0x54] sm:$0xf]  ;;  %v1053_v29 = vor.u32 %v1281_v24, %v1052_v23 }
   0x8   :  { %221 = vmatpush.bf16.msra.mxu0 %v1061_v16  ;;  %v1054_v30 = vld [vmem:[%s1915_s1 + $0x58] sm:$0xf0]  ;;  %v1296_v31 = vld [vmem:[%s1915_s1 + $0xd4] sm:$0xf]  ;;  %v1117_v33 = vor.u32 %v1297_v27, %v1116_v26  ;;  %v1044_v35 = vld [vmem:[%s1915_s1 + $0x40] sm:$0xf] }
   0x9   :  { %v1118_v32 = vld [vmem:[%s1915_s1 + $0xd8] sm:$0xf0]  ;;  %234 = vmatpush.bf16.msra.mxu1 %v1125_v17  ;;  %247 = vmatpush.bf16.msra.mxu2 %v1065_v21  ;;  %v1057_v34 = vor.u32 %v1280_v28, %v1054_v30  ;;  %v1279_v36 = vld [vmem:[%s1915_s1 + $0x44] sm:$0xf0]  ;;  %v1108_v37 = vld [vmem:[%s1915_s1 + $0xc0] sm:$0xf] }
   0xa   :  { %260 = vmatpush.bf16.msra.mxu3 %v1129_v25  ;;  %v1121_v38 = vor.u32 %v1296_v31, %v1118_v32  ;;  %v1295_v39 = vld [vmem:[%s1915_s1 + $0xc4] sm:$0xf0]  ;;  %v1278_v40 = vld [vmem:[%s1915_s1 + $0x44] sm:$0xf]  ;;  %v1046_v41 = vld [vmem:[%s1915_s1 + $0x48] sm:$0xf0]  ;;  %v1045_v44 = vor.u32 %v1279_v36, %v1044_v35 }
   0xb   :  { %v1294_v42 = vld [vmem:[%s1915_s1 + $0xc4] sm:$0xf]  ;;  %v1110_v43 = vld [vmem:[%s1915_s1 + $0xc8] sm:$0xf0]  ;;  %v1109_v45 = vor.u32 %v1295_v39, %v1108_v37  ;;  %v1049_v46 = vor.u32 %v1278_v40, %v1046_v41  ;;  %v1036_v47 = vld [vmem:[%s1915_s1 + $0x30] sm:$0xf] }
   0xc   :  { %222 = vmatpush.bf16.msra.mxu0 %v1053_v29  ;;  %v1277_v48 = vld [vmem:[%s1915_s1 + $0x34] sm:$0xf0]  ;;  %v1100_v49 = vld [vmem:[%s1915_s1 + $0xb0] sm:$0xf]  ;;  %v1113_v50 = vor.u32 %v1294_v42, %v1110_v43  ;;  %v1276_v52 = vld [vmem:[%s1915_s1 + $0x34] sm:$0xf] }
   0xd   :  { %235 = vmatpush.bf16.msra.mxu1 %v1117_v33  ;;  %248 = vmatpush.bf16.msra.mxu2 %v1057_v34  ;;  %v1293_v51 = vld [vmem:[%s1915_s1 + $0xb4] sm:$0xf0]  ;;  %v1038_v53 = vld [vmem:[%s1915_s1 + $0x38] sm:$0xf0]  ;;  %v1292_v54 = vld [vmem:[%s1915_s1 + $0xb4] sm:$0xf]  ;;  %v1037_v56 = vor.u32 %v1277_v48, %v1036_v47 }
   0xe   :  { %261 = vmatpush.bf16.msra.mxu3 %v1121_v38  ;;  %v1102_v55 = vld [vmem:[%s1915_s1 + $0xb8] sm:$0xf0]  ;;  %v1101_v57 = vor.u32 %v1293_v51, %v1100_v49  ;;  %v1041_v58 = vor.u32 %v1276_v52, %v1038_v53  ;;  %v1028_v59 = vld [vmem:[%s1915_s1 + $0x20] sm:$0xf]  ;;  %v1275_v60 = vld [vmem:[%s1915_s1 + $0x24] sm:$0xf0] }
   0xf   :  { %v1092_v61 = vld [vmem:[%s1915_s1 + $0xa0] sm:$0xf]  ;;  %v1105_v62 = vor.u32 %v1292_v54, %v1102_v55  ;;  %v1291_v63 = vld [vmem:[%s1915_s1 + $0xa4] sm:$0xf0]  ;;  %v1274_v0 = vld [vmem:[%s1915_s1 + $0x24] sm:$0xf]  ;;  %v1029_v4 = vor.u32 %v1275_v60, %v1028_v59 }
  0x10   :  { %223 = vmatpush.bf16.msra.mxu0 %v1045_v44  ;;  %v1030_v1 = vld [vmem:[%s1915_s1 + $0x28] sm:$0xf0]  ;;  %v1290_v2 = vld [vmem:[%s1915_s1 + $0xa4] sm:$0xf]  ;;  %v1093_v5 = vor.u32 %v1291_v63, %v1092_v61  ;;  %v1020_v7 = vld [vmem:[%s1915_s1 + $0x10] sm:$0xf] }
  0x11   :  { %236 = vmatpush.bf16.msra.mxu1 %v1109_v45  ;;  %249 = vmatpush.bf16.msra.mxu2 %v1049_v46  ;;  %v1094_v3 = vld [vmem:[%s1915_s1 + $0xa8] sm:$0xf0]  ;;  %v1033_v6 = vor.u32 %v1274_v0, %v1030_v1  ;;  %v1273_v8 = vld [vmem:[%s1915_s1 + $0x14] sm:$0xf0]  ;;  %v1084_v9 = vld [vmem:[%s1915_s1 + $0x90] sm:$0xf] }
  0x12   :  { %262 = vmatpush.bf16.msra.mxu3 %v1113_v50  ;;  %v1097_v10 = vor.u32 %v1290_v2, %v1094_v3  ;;  %v1289_v11 = vld [vmem:[%s1915_s1 + $0x94] sm:$0xf0]  ;;  %v1272_v12 = vld [vmem:[%s1915_s1 + $0x14] sm:$0xf]  ;;  %v1022_v13 = vld [vmem:[%s1915_s1 + $0x18] sm:$0xf0] }
  0x13   :  { %v1288_v14 = vld [vmem:[%s1915_s1 + $0x94] sm:$0xf]  ;;  %v1086_v15 = vld [vmem:[%s1915_s1 + $0x98] sm:$0xf0] }
  0x14   :  { %224 = vmatpush.bf16.msra.mxu0 %v1037_v56 }
  0x15   :  { %237 = vmatpush.bf16.msra.mxu1 %v1101_v57  ;;  %250 = vmatpush.bf16.msra.mxu2 %v1041_v58 }
  0x16   :  { %263 = vmatpush.bf16.msra.mxu3 %v1105_v62 }
  0x17   :  { %9 = vsyncpa [#allocation3], 0  ;;  %v1021_v16 = vor.u32 %v1273_v8, %v1020_v7  ;;  %v18_v17 = vld [vmem:[%s1914_s0] sm:$0xff]  ;;  %v1085_v18 = vor.u32 %v1289_v11, %v1084_v9  ;;  %v1025_v19 = vor.u32 %v1272_v12, %v1022_v13  ;;  %v1271_v21 = vld [vmem:[%s1915_s1 + $0x4] sm:$0xf0]  ;;  %v1089_v23 = vor.u32 %v1288_v14, %v1086_v15  ;;  %s1000_s20 = sshll.u32 %s1918_s4, 4  ;;  %s1001_s20 = int_to_ptr.vmem [resolvable:$true] %s1000_s20 }
  0x18   :  { %225 = vmatpush.bf16.msra.mxu0 %v1029_v4  ;;  %v1012_v20 = vld [vmem:[%s1915_s1] sm:$0xf]  ;;  %v1287_v24 = vld [vmem:[%s1915_s1 + $0x84] sm:$0xf0]  ;;  %v1270_v25 = vld [vmem:[%s1915_s1 + $0x4] sm:$0xf]  ;;  %v54_v29 = vunpack.c.l.b16 %v18_v17  ;;  %v55_v31 = vunpack.c.h.b16 %v18_v17 }
  0x19   :  { %238 = vmatpush.bf16.msra.mxu1 %v1093_v5  ;;  %251 = vmatpush.bf16.msra.mxu2 %v1033_v6  ;;  %v1076_v22 = vld [vmem:[%s1915_s1 + $0x80] sm:$0xf]  ;;  %v1014_v26 = vld [vmem:[%s1915_s1 + $0x8] sm:$0xf0]  ;;  %v1286_v27 = vld [vmem:[%s1915_s1 + $0x84] sm:$0xf]  ;;  %v1013_v30 = vor.u32 %v1271_v21, %v1012_v20 }
  0x1a   :  { %264 = vmatpush.bf16.msra.mxu3 %v1097_v10  ;;  %v1078_v28 = vld [vmem:[%s1915_s1 + $0x88] sm:$0xf0]  ;;  %v1077_v32 = vor.u32 %v1287_v24, %v1076_v22  ;;  %v1017_v33 = vor.u32 %v1270_v25, %v1014_v26  ;;  %v56_v35 = vpack.c.b16 %v54_v29, %v54_v29  ;;  %v57_v36 = vpack.c.b16 %v55_v31, %v55_v31  ;;  %v51_v38 = vld [vmem:[%s1916_s2] sm:$0xff]  ;;  %v1200_v59 = vld [vmem:[%s1917_s3 + $0x70] sm:$0xf]  ;;  %s1397_s23 = smov [#allocation2]  }
  0x1b   :  { %v1081_v34 = vor.u32 %v1286_v27, %v1078_v28  ;;  %v52_v41 = vld [vmem:[%s1916_s2 + $0x8] sm:$0xff]  ;;  %v1317_v60 = vld [vmem:[%s1917_s3 + $0x74] sm:$0xf0]  ;;  %v1264_v61 = vld [vmem:[%s1917_s3 + $0xf0] sm:$0xf]  ;;  %vm566_vm3 = vcmask 1043458  }
  0x1c   :  { %226 = vmatpush.bf16.msra.mxu0 %v1021_v16  ;;  %v1201_v62 = vor.u32 %v1317_v60, %v1200_v59  ;;  %v1333_v63 = vld [vmem:[%s1917_s3 + $0xf4] sm:$0xf0]  ;;  %v1316_v0 = vld [vmem:[%s1917_s3 + $0x74] sm:$0xf]  ;;  %v1202_v1 = vld [vmem:[%s1917_s3 + $0x78] sm:$0xf0] }
  0x1d   :  { %239 = vmatpush.bf16.msra.mxu1 %v1085_v18  ;;  %252 = vmatpush.bf16.msra.mxu2 %v1025_v19  ;;  %v1265_v2 = vor.u32 %v1333_v63, %v1264_v61  ;;  %v1205_v3 = vor.u32 %v1316_v0, %v1202_v1  ;;  %v1332_v4 = vld [vmem:[%s1917_s3 + $0xf4] sm:$0xf]  ;;  %v1266_v5 = vld [vmem:[%s1917_s3 + $0xf8] sm:$0xf0]  ;;  %v1192_v7 = vld [vmem:[%s1917_s3 + $0x60] sm:$0xf] }
  0x1e   :  { %265 = vmatpush.bf16.msra.mxu3 %v1089_v23  ;;  %v1269_v6 = vor.u32 %v1332_v4, %v1266_v5  ;;  %v1315_v8 = vld [vmem:[%s1917_s3 + $0x64] sm:$0xf0]  ;;  %v1256_v9 = vld [vmem:[%s1917_s3 + $0xe0] sm:$0xf]  ;;  %v1314_v12 = vld [vmem:[%s1917_s3 + $0x64] sm:$0xf] }
  0x1f   :  { %v1193_v10 = vor.u32 %v1315_v8, %v1192_v7  ;;  %v1331_v11 = vld [vmem:[%s1917_s3 + $0xe4] sm:$0xf0]  ;;  %v1194_v13 = vld [vmem:[%s1917_s3 + $0x68] sm:$0xf0]  ;;  %v1330_v16 = vld [vmem:[%s1917_s3 + $0xe4] sm:$0xf] }
  0x20   :  { %227 = vmatpush.bf16.msra.mxu0 %v1013_v30  ;;  %v1257_v14 = vor.u32 %v1331_v11, %v1256_v9  ;;  %v1197_v15 = vor.u32 %v1314_v12, %v1194_v13  ;;  %v1258_v17 = vld [vmem:[%s1917_s3 + $0xe8] sm:$0xf0]  ;;  %v1184_v19 = vld [vmem:[%s1917_s3 + $0x50] sm:$0xf]  ;;  %v1313_v20 = vld [vmem:[%s1917_s3 + $0x54] sm:$0xf0] }
  0x21   :  { %240 = vmatpush.bf16.msra.mxu1 %v1077_v32  ;;  %253 = vmatpush.bf16.msra.mxu2 %v1017_v33  ;;  %v1261_v18 = vor.u32 %v1330_v16, %v1258_v17  ;;  %v1248_v21 = vld [vmem:[%s1917_s3 + $0xd0] sm:$0xf]  ;;  %v1185_v22 = vor.u32 %v1313_v20, %v1184_v19  ;;  %v1329_v23 = vld [vmem:[%s1917_s3 + $0xd4] sm:$0xf0]  ;;  %v1312_v24 = vld [vmem:[%s1917_s3 + $0x54] sm:$0xf] }
  0x22   :  { %266 = vmatpush.bf16.msra.mxu3 %v1081_v34  ;;  %v1186_v25 = vld [vmem:[%s1917_s3 + $0x58] sm:$0xf0]  ;;  %v1249_v26 = vor.u32 %v1329_v23, %v1248_v21  ;;  %v1328_v28 = vld [vmem:[%s1917_s3 + $0xd4] sm:$0xf]  ;;  %v1176_v31 = vld [vmem:[%s1917_s3 + $0x40] sm:$0xf] }
  0x23   :  { %228 = vmatmul.bf16.vlgmr.msra.gmra.mxu0 %v56_v35  ;;  %v1189_v27 = vor.u32 %v1312_v24, %v1186_v25  ;;  %v1250_v29 = vld [vmem:[%s1917_s3 + $0xd8] sm:$0xf0]  ;;  %v1311_v32 = vld [vmem:[%s1917_s3 + $0x44] sm:$0xf0]  ;;  %v1240_v33 = vld [vmem:[%s1917_s3 + $0xc0] sm:$0xf] }
  0x24   :  { %241 = vmatmul.bf16.vlgmr.msra.gmra.mxu1 %v57_v36  ;;  %254 = vmatmul.bf16.vlgmr.msra.gmra.mxu2 %v56_v35  ;;  %v1253_v30 = vor.u32 %v1328_v28, %v1250_v29  ;;  %v1177_v34 = vor.u32 %v1311_v32, %v1176_v31  ;;  %v1327_v35 = vld [vmem:[%s1917_s3 + $0xc4] sm:$0xf0]  ;;  %v1224_v60 = vld [vmem:[%s1917_s3 + $0xa0] sm:$0xf]  ;;  %v1306_v63 = vld [vmem:[%s1917_s3 + $0x24] sm:$0xf] }
  0x25   :  { %267 = vmatmul.bf16.vlgmr.msra.gmra.mxu3 %v57_v36  ;;  %503 = vmatpush.bf16.msrb.mxu0 %v1201_v62  ;;  %v1310_v36 = vld [vmem:[%s1917_s3 + $0x44] sm:$0xf]  ;;  %v1307_v59 = vld [vmem:[%s1917_s3 + $0x24] sm:$0xf0]  ;;  %v1162_v0 = vld [vmem:[%s1917_s3 + $0x28] sm:$0xf0] }
  0x26   :  { %516 = vmatpush.bf16.msrb.mxu1 %v1265_v2  ;;  %529 = vmatpush.bf16.msrb.mxu2 %v1205_v3  ;;  %v1323_v62 = vld [vmem:[%s1917_s3 + $0xa4] sm:$0xf0]  ;;  %v1165_v2 = vor.u32 %v1306_v63, %v1162_v0  ;;  %v1322_v3 = vld [vmem:[%s1917_s3 + $0xa4] sm:$0xf]  ;;  %v1226_v4 = vld [vmem:[%s1917_s3 + $0xa8] sm:$0xf0] }
  0x27   :  { %542 = vmatpush.bf16.msrb.mxu3 %v1269_v6  ;;  %v1225_v1 = vor.u32 %v1323_v62, %v1224_v60  ;;  %v1152_v5 = vld [vmem:[%s1917_s3 + $0x10] sm:$0xf]  ;;  %v1229_v6 = vor.u32 %v1322_v3, %v1226_v4  ;;  %v1305_v7 = vld [vmem:[%s1917_s3 + $0x14] sm:$0xf0]  ;;  %v1304_v12 = vld [vmem:[%s1917_s3 + $0x14] sm:$0xf] }
  0x28   :  { %v1216_v8 = vld [vmem:[%s1917_s3 + $0x90] sm:$0xf]  ;;  %v1321_v9 = vld [vmem:[%s1917_s3 + $0x94] sm:$0xf0]  ;;  %v1154_v13 = vld [vmem:[%s1917_s3 + $0x18] sm:$0xf0] }
  0x29   :  { %504 = vmatpush.bf16.msrb.mxu0 %v1193_v10  ;;  %v1153_v10 = vor.u32 %v1305_v7, %v1152_v5  ;;  %v1217_v11 = vor.u32 %v1321_v9, %v1216_v8  ;;  %v1218_v16 = vld [vmem:[%s1917_s3 + $0x98] sm:$0xf0]  ;;  %v1144_v17 = vld [vmem:[%s1917_s3] sm:$0xf]  ;;  %v1319_v21 = vld [vmem:[%s1917_s3 + $0x84] sm:$0xf0] }
  0x2a   :  { %517 = vmatpush.bf16.msrb.mxu1 %v1257_v14  ;;  %530 = vmatpush.bf16.msrb.mxu2 %v1197_v15  ;;  %v1320_v14 = vld [vmem:[%s1917_s3 + $0x94] sm:$0xf]  ;;  %v1157_v15 = vor.u32 %v1304_v12, %v1154_v13  ;;  %v1208_v20 = vld [vmem:[%s1917_s3 + $0x80] sm:$0xf]  ;;  %v1146_v24 = vld [vmem:[%s1917_s3 + $0x8] sm:$0xf0] }
  0x2b   :  { %543 = vmatpush.bf16.msrb.mxu3 %v1261_v18  ;;  %v1303_v18 = vld [vmem:[%s1917_s3 + $0x4] sm:$0xf0]  ;;  %v1221_v19 = vor.u32 %v1320_v14, %v1218_v16  ;;  %v1318_v25 = vld [vmem:[%s1917_s3 + $0x84] sm:$0xf]  ;;  %vm797_vm4 = vcmask 1045508   ;;  %vm583_vm5 = vcmask 1041408  }
  0x2c   :  { %v1145_v23 = vor.u32 %v1303_v18, %v1144_v17 }
  0x2d   :  { %505 = vmatpush.bf16.msrb.mxu0 %v1185_v22  ;;  %v1302_v22 = vld [vmem:[%s1917_s3 + $0x4] sm:$0xf] }
  0x2e   :  { %518 = vmatpush.bf16.msrb.mxu1 %v1249_v26  ;;  %531 = vmatpush.bf16.msrb.mxu2 %v1189_v27  ;;  %v1210_v26 = vld [vmem:[%s1917_s3 + $0x88] sm:$0xf0]  ;;  %v1209_v27 = vor.u32 %v1319_v21, %v1208_v20  ;;  %v1149_v28 = vor.u32 %v1302_v22, %v1146_v24 }
  0x2f   :  { %544 = vmatpush.bf16.msrb.mxu3 %v1253_v30  ;;  %v1213_v29 = vor.u32 %v1318_v25, %v1210_v26 }
  0x31   :  { %506 = vmatpush.bf16.msrb.mxu0 %v1177_v34 }
  0xa0   :  { %v229_v37 = vpop.f32.mrf.mxu0 }
  0xa1   :  { %v242_v39 = vpop.f32.mrf.mxu1  ;;  %v230_v40 = vadd.f32 %v229_v37, %v51_v38  ;;  %v1178_v37 = vld [vmem:[%s1917_s3 + $0x48] sm:$0xf0]  ;;  %v1241_v38 = vor.u32 %v1327_v35, %v1240_v33 }
  0xa3   :  { %v243_v43 = vadd.f32 %v242_v39, %v230_v40  ;;  %v1181_v39 = vor.u32 %v1310_v36, %v1178_v37  ;;  %v1326_v40 = vld [vmem:[%s1917_s3 + $0xc4] sm:$0xf]  ;;  %519 = vmatpush.bf16.msrb.mxu1 %v1241_v38 }
  0xa5   :  { %532 = vmatpush.bf16.msrb.mxu2 %v1181_v39 }
  0xa7   :  { %v255_v42 = vpop.f32.mrf.mxu2 }
  0xa8   :  { %v256_v44 = vadd.f32 %v255_v42, %v52_v41  ;;  %v268_v45 = vpop.f32.mrf.mxu3  ;;  %v231_v46 = vpop.f32.mrf.mxu0  ;;  %v1242_v41 = vld [vmem:[%s1917_s3 + $0xc8] sm:$0xf0] }
  0xa9   :  { %v244_v47 = vpop.f32.mrf.mxu1  ;;  %v1245_v42 = vor.u32 %v1326_v40, %v1242_v41 }
  0xaa   :  { %v269_v48 = vadd.f32 %v268_v45, %v256_v44  ;;  %v1309_v44 = vld [vmem:[%s1917_s3 + $0x34] sm:$0xf0]  ;;  %v1232_v45 = vld [vmem:[%s1917_s3 + $0xb0] sm:$0xf] }
  0xab   :  { %545 = vmatpush.bf16.msrb.mxu3 %v1245_v42  ;;  %v1325_v47 = vld [vmem:[%s1917_s3 + $0xb4] sm:$0xf0]  ;;  %v1138_v42 = vld [vmem:[%s1916_s2 + $0x10] sm:$0xff] }
  0xac   :  { %v272_v49 = vadd.f32 %v269_v48, %v243_v43 }
  0xae   :  { %273 = vadd.xlane.f32.xlu0 %v272_v49  ;;  %v1170_v49 = vld [vmem:[%s1917_s3 + $0x38] sm:$0xf0] }
  0xaf   :  { %v257_v50 = vpop.f32.mrf.mxu2 }
  0xb0   :  { %v270_v51 = vpop.f32.mrf.mxu3  ;;  %v1233_v50 = vor.u32 %v1325_v47, %v1232_v45  ;;  %v1140_v45 = vld [vmem:[%s1916_s2 + $0x20] sm:$0xff] }
  0xb2   :  { %520 = vmatpush.bf16.msrb.mxu1 %v1233_v50 }
  0xb6   :  { %521 = vmatpush.bf16.msrb.mxu1 %v1225_v1 }
  0xba   :  { %522 = vmatpush.bf16.msrb.mxu1 %v1217_v11 }
  0xbe   :  { %523 = vmatpush.bf16.msrb.mxu1 %v1209_v27 }
 0x121   :  { %v274_v52 = vpop.xlane.xlu0 %273 }
 0x122   :  { %v1624_v53 = vmul.f32 0.0078125, %v274_v52  ;;  %v1324_v52 = vld [vmem:[%s1917_s3 + $0xb4] sm:$0xf] }
 0x124   :  { %v1627_v54 = vsub.f32 %v243_v43, %v1624_v53  ;;  %v1630_v55 = vsub.f32 %v269_v48, %v1624_v53  ;;  %v1168_v43 = vld [vmem:[%s1917_s3 + $0x30] sm:$0xf]  ;;  %v1308_v48 = vld [vmem:[%s1917_s3 + $0x34] sm:$0xf]  ;;  %v284_v31 = vmul.f32 %v1624_v53, %v1624_v53  ;;  %v1139_v53 = vld [vmem:[%s1916_s2 + $0x18] sm:$0xff] }
 0x125   :  { %v1169_v46 = vor.u32 %v1309_v44, %v1168_v43  ;;  %v1173_v51 = vor.u32 %v1308_v48, %v1170_v49 }
 0x126   :  { %v278_v56 = vmul.f32 %v1627_v54, %v1627_v54  ;;  %v279_v57 = vmul.f32 %v1630_v55, %v1630_v55 }
 0x127   :  { %507 = vmatpush.bf16.msrb.mxu0 %v1169_v46  ;;  %533 = vmatpush.bf16.msrb.mxu2 %v1173_v51  ;;  %v1141_v46 = vld [vmem:[%s1916_s2 + $0x28] sm:$0xff] }
 0x128   :  { %v280_v58 = vadd.f32 %v279_v57, %v278_v56  ;;  %v1234_v56 = vld [vmem:[%s1917_s3 + $0xb8] sm:$0xf0] }
 0x129   :  { %v1237_v57 = vor.u32 %v1324_v52, %v1234_v56 }
 0x12a   :  { %281 = vadd.xlane.f32.xlu0 %v280_v58  ;;  %v1160_v58 = vld [vmem:[%s1917_s3 + $0x20] sm:$0xf] }
 0x12b   :  { %546 = vmatpush.bf16.msrb.mxu3 %v1237_v57  ;;  %v1161_v61 = vor.u32 %v1307_v59, %v1160_v58  ;;  %534 = vmatpush.bf16.msrb.mxu2 %v1165_v2 }
 0x12d   :  { %508 = vmatpush.bf16.msrb.mxu0 %v1161_v61 }
 0x12f   :  { %547 = vmatpush.bf16.msrb.mxu3 %v1229_v6  ;;  %535 = vmatpush.bf16.msrb.mxu2 %v1157_v15 }
 0x131   :  { %509 = vmatpush.bf16.msrb.mxu0 %v1153_v10 }
 0x133   :  { %548 = vmatpush.bf16.msrb.mxu3 %v1221_v19  ;;  %536 = vmatpush.bf16.msrb.mxu2 %v1149_v28 }
 0x135   :  { %510 = vmatpush.bf16.msrb.mxu0 %v1145_v23 }
 0x137   :  { %549 = vmatpush.bf16.msrb.mxu3 %v1213_v29 }
 0x19d   :  { %v282_v30 = vpop.xlane.xlu0 %281 }
 0x19e   :  { %v283_v32 = vmul.f32 0.0078125, %v282_v30 }
 0x1a0   :  { %v285_v33 = vsub.f32 %v283_v32, %v284_v31 }
 0x1a2   :  { %v286_v34 = vadd.f32 1e-05, %v285_v33 }
 0x1a4   :  { %1346 = vrsqrt.f32 %v286_v34  ;;  %vm293_vm1 = vweird.f32 %v286_v34 }
 0x1aa   :  { %v1347_v35 = vpop.eup %1346 }
 0x1ab   :  { %v288_v36 = vmul.f32 %v1347_v35, %v286_v34  ;;  %vm294_vm0 = vweird.f32 %v1347_v35 }
 0x1ac   :  { %vm295_vm2 = vmor %vm293_vm1, %vm294_vm0 }
 0x1ad   :  { %v289_v37 = vmul.f32 %v1347_v35, %v288_v36 }
 0x1af   :  { %v290_v38 = vmul.f32 0.5, %v289_v37 }
 0x1b1   :  { %v291_v39 = vsub.f32 1.5, %v290_v38 }
 0x1b3   :  { %v292_v40 = vmul.f32 %v1347_v35, %v291_v39 }
 0x1b5   :  { %v296_v41 = vsel %vm295_vm2, %v1347_v35, %v292_v40 }
 0x1b6   :  { %v297_v43 = vmul.f32 %v296_v41, %v1627_v54  ;;  %v298_v44 = vmul.f32 %v296_v41, %v1630_v55 }
 0x1b8   :  { %v302_v47 = vmul.f32 %v1138_v42, %v297_v43  ;;  %v303_v48 = vmul.f32 %v1139_v53, %v298_v44 }
 0x1ba   :  { %v307_v49 = vadd.f32 %v1140_v45, %v302_v47  ;;  %v308_v50 = vadd.f32 %v1141_v46, %v303_v48 }
 0x1bc   :  { %v309_v51 = vpack.c.bf16 %v307_v49, %v307_v49  ;;  %v310_v52 = vpack.c.bf16 %v308_v50, %v308_v50 }
 0x1be   :  { %511 = vmatmul.bf16.vlgmr.msrb.gmra.mxu0 %v309_v51  ;;  %524 = vmatmul.bf16.vlgmr.msrb.gmra.mxu1 %v310_v52 }
 0x1bf   :  { %537 = vmatmul.bf16.vlgmr.msrb.gmra.mxu2 %v309_v51  ;;  %550 = vmatmul.bf16.vlgmr.msrb.gmra.mxu3 %v310_v52 }
 0x23b   :  { %v512_v54 = vpop.f32.mrf.mxu0  ;;  %v525_v55 = vpop.f32.mrf.mxu1 }
 0x23c   :  { %v1851_v5 = vadd.f32 %v525_v55, %v512_v54 }
 0x23e   :  { %v582_v8 = vmul.f32 %v1851_v5, %v1851_v5 }
 0x240   :  { %v584_v9 = vsel %vm583_vm5, %v582_v8, 0.0 }
 0x242   :  { %v538_v56 = vpop.f32.mrf.mxu2  ;;  %v551_v57 = vpop.f32.mrf.mxu3 }
 0x243   :  { %v1844_v58 = vadd.f32 %v551_v57, %v538_v56  ;;  %v514_v59 = vpop.f32.mrf.mxu0  ;;  %v527_v60 = vpop.f32.mrf.mxu1  ;;  %v560_v57 = vlaneseq }
 0x245   :  { %v781_v61 = vmul.f32 %v1844_v58, %v1844_v58  ;;  %v556_v62 = vrot.slane %v1844_v58, 2  ;;  %v563_v59 = vand.u32 127, %v560_v57 }
 0x247   :  { %v782_v63 = vsel %vm566_vm3, %v781_v61, 0.0  ;;  %v558_v0 = vadd.f32 %v556_v62, %v1844_v58  ;;  %v798_v7 = vsel %vm797_vm4, %v781_v61, 0.0  ;;  %vm696_vm4 = vcmask 9216  }
 0x248   :  { %783 = vadd.xlane.f32.xlu2 %v782_v63 }
 0x249   :  { %v559_v1 = vmul.f32 0.5, %v558_v0 }
 0x24a   :  { %v540_v2 = vpop.f32.mrf.mxu2  ;;  %v553_v3 = vpop.f32.mrf.mxu3 }
 0x24b   :  { %v565_v4 = vmul.f32 %v559_v1, %v559_v1 }
 0x24d   :  { %v567_v6 = vsel %vm566_vm3, %v565_v4, 0.0 }
 0x24e   :  { %568 = vadd.xlane.f32.xlu1 %v567_v6 }
 0x250   :  { %799 = vadd.xlane.f32.xlu2 %v798_v7 }
 0x256   :  { %585 = vadd.xlane.f32.xlu1 %v584_v9 }
 0x2bb   :  { %v784_v10 = vpop.xlane.xlu2 %783 }
 0x2bc   :  { %v785_v11 = vadd.f32 1e-12, %v784_v10 }
 0x2be   :  { %1348 = vrsqrt.f32 %v785_v11  ;;  %vm792_vm7 = vweird.f32 %v785_v11 }
 0x2c1   :  { %v569_v12 = vpop.xlane.xlu1 %568 }
 0x2c2   :  { %v570_v13 = vadd.f32 1e-12, %v569_v12 }
 0x2c3   :  { %v800_v14 = vpop.xlane.xlu2 %799 }
 0x2c4   :  { %v1349_v15 = vpop.eup %1348  ;;  %1350 = vrsqrt.f32 %v570_v13  ;;  %v801_v16 = vadd.f32 1e-12, %v800_v14  ;;  %vm577_vm10 = vweird.f32 %v570_v13 }
 0x2c5   :  { %v787_v17 = vmul.f32 %v1349_v15, %v785_v11  ;;  %vm793_vm6 = vweird.f32 %v1349_v15 }
 0x2c6   :  { %1352 = vrsqrt.f32 %v801_v16  ;;  %vm794_vm8 = vmor %vm792_vm7, %vm793_vm6  ;;  %vm808_vm13 = vweird.f32 %v801_v16 }
 0x2c7   :  { %v788_v18 = vmul.f32 %v1349_v15, %v787_v17 }
 0x2c9   :  { %v789_v19 = vmul.f32 0.5, %v788_v18  ;;  %v586_v20 = vpop.xlane.xlu1 %585 }
 0x2ca   :  { %v1351_v21 = vpop.eup %1350  ;;  %v587_v22 = vadd.f32 1e-12, %v586_v20 }
 0x2cb   :  { %v790_v23 = vsub.f32 1.5, %v789_v19  ;;  %v572_v24 = vmul.f32 %v1351_v21, %v570_v13  ;;  %vm578_vm9 = vweird.f32 %v1351_v21 }
 0x2cc   :  { %v1353_v25 = vpop.eup %1352  ;;  %1354 = vrsqrt.f32 %v587_v22  ;;  %vm579_vm12 = vmor %vm577_vm10, %vm578_vm9  ;;  %vm594_vm0 = vweird.f32 %v587_v22 }
 0x2cd   :  { %v573_v26 = vmul.f32 %v1351_v21, %v572_v24  ;;  %v803_v27 = vmul.f32 %v1353_v25, %v801_v16  ;;  %v791_v28 = vmul.f32 %v1349_v15, %v790_v23  ;;  %vm809_vm11 = vweird.f32 %v1353_v25 }
 0x2ce   :  { %vm810_vm14 = vmor %vm808_vm13, %vm809_vm11 }
 0x2cf   :  { %v574_v29 = vmul.f32 0.5, %v573_v26  ;;  %v804_v30 = vmul.f32 %v1353_v25, %v803_v27  ;;  %v795_v34 = vsel %vm794_vm8, %v1349_v15, %v791_v28 }
 0x2d0   :  { %v796_v38 = vmul.f32 %v795_v34, %v1844_v58 }
 0x2d1   :  { %v575_v31 = vsub.f32 1.5, %v574_v29  ;;  %v805_v32 = vmul.f32 0.5, %v804_v30 }
 0x2d2   :  { %v1355_v33 = vpop.eup %1354  ;;  %v814_v47 = vrot.slane %v796_v38, 2 }
 0x2d3   :  { %v576_v35 = vmul.f32 %v1351_v21, %v575_v31  ;;  %v806_v36 = vsub.f32 1.5, %v805_v32  ;;  %v589_v37 = vmul.f32 %v1355_v33, %v587_v22  ;;  %vm595_vm15 = vweird.f32 %v1355_v33 }
 0x2d4   :  { %vm596_vm1 = vmor %vm594_vm0, %vm595_vm15 }
 0x2d5   :  { %v580_v39 = vsel %vm579_vm12, %v1351_v21, %v576_v35  ;;  %v807_v40 = vmul.f32 %v1353_v25, %v806_v36  ;;  %v590_v41 = vmul.f32 %v1355_v33, %v589_v37 }
 0x2d6   :  { %v581_v42 = vmul.f32 %v580_v39, %v559_v1 }
 0x2d7   :  { %v811_v53 = vsel %vm810_vm14, %v1353_v25, %v807_v40  ;;  %v591_v43 = vmul.f32 0.5, %v590_v41 }
 0x2d8   :  { %v812_v44 = vmul.f32 %v811_v53, %v1844_v58  ;;  %v600_v45 = vrot.slane %v581_v42, 2  ;;  %v561_v58 = vshrl.u32 %v560_v57, 7 }
 0x2d9   :  { %v592_v46 = vsub.f32 1.5, %v591_v43 }
 0x2da   :  { %617 = vmatpush.xpose.msra.mxu0 %v600_v45  ;;  %682 = vmatpush.xpose.msra.mxu3 %v600_v45  ;;  %v905_v48 = vrot.slane %v812_v44, 2  ;;  %v839_v54 = vrot.slane %v812_v44, 4  ;;  %vm564_vm2 = vcmp.eq.s32.totalorder %v561_v58, %v563_v59 }
 0x2db   :  { %v593_v49 = vmul.f32 %v1355_v33, %v592_v46 }
 0x2dc   :  { %v1858_v50 = vmul.f32 %v905_v48, %v796_v38 }
 0x2dd   :  { %v597_v51 = vsel %vm596_vm1, %v1355_v33, %v593_v49  ;;  %618 = vmatmul.f32.vlgmr.msra.gmra.mxu0 %v600_v45 }
 0x2de   :  { %831 = vmatpush.xpose.msrb.mxu0 %v814_v47  ;;  %899 = vmatpush.xpose.msrb.mxu3 %v814_v47  ;;  %v598_v52 = vmul.f32 %v597_v51, %v1851_v5 }
 0x2e0   :  { %639 = vmatpush.xpose.msra.mxu1 %v598_v52  ;;  %661 = vmatpush.xpose.msra.mxu2 %v598_v52  ;;  %v689_v55 = vrot.slane %v598_v52, 6 }
 0x2e1   :  { %683 = vmatmul.f32.vlgmr.msra.gmra.mxu3 %v598_v52 }
 0x2e2   :  { %v1861_v56 = vmul.f32 %v689_v55, %v581_v42 }
 0x2e3   :  { %640 = vmatmul.f32.vlgmr.msra.gmra.mxu1 %v598_v52  ;;  %662 = vmatmul.f32.vlgmr.msra.gmra.mxu2 %v600_v45 }
 0x2e4   :  { %856 = vmatpush.xpose.msrb.mxu1 %v839_v54  ;;  %878 = vmatpush.xpose.msrb.mxu2 %v839_v54 }
 0x2e5   :  { %832 = vmatmul.f32.vlgmr.msrb.gmra.mxu0 %v814_v47 }
 0x2e9   :  { %900 = vmatmul.f32.vlgmr.msrb.gmra.mxu3 %v839_v54 }
 0x2eb   :  { %857 = vmatmul.f32.vlgmr.msrb.gmra.mxu1 %v839_v54  ;;  %879 = vmatmul.f32.vlgmr.msrb.gmra.mxu2 %v814_v47 }
 0x35a   :  { %v619_v60 = vpop.f32.mrf.mxu0 }
 0x35b   :  { %v622_v61 = vmul.f32 14.285714, %v619_v60 }
 0x35d   :  { %v623_v62 = vsel %vm564_vm2, -1e+09, %v622_v61 }
 0x35e   :  { %v697_v63 = vsel %vm696_vm4, %v623_v62, -inf }
 0x35f   :  { %698 = vmax.xlane.f32.xlu0 %v697_v63 }
 0x360   :  { %v641_v0 = vpop.f32.mrf.mxu1 }
 0x361   :  { %v644_v1 = vmul.f32 14.285714, %v641_v0 }
 0x362   :  { %v833_v7 = vpop.f32.mrf.mxu0 }
 0x363   :  { %v645_v2 = vsel %vm564_vm2, -1e+09, %v644_v1  ;;  %v836_v13 = vmul.f32 14.285714, %v833_v7  ;;  %v908_v7 = vsel %vm566_vm3, %v1858_v50, 0.0 }
 0x364   :  { %v684_v3 = vpop.f32.mrf.mxu3  ;;  %v735_v4 = vsel %vm696_vm4, %v645_v2, -inf }
 0x365   :  { %v687_v5 = vmul.f32 14.285714, %v684_v3  ;;  %736 = vmax.xlane.f32.xlu2 %v735_v4  ;;  %v837_v16 = vsel %vm564_vm2, -1e+09, %v836_v13 }
 0x366   :  { %v663_v6 = vpop.f32.mrf.mxu2  ;;  %v912_v20 = vsel %vm696_vm4, %v837_v16, -inf }
 0x367   :  { %v666_v8 = vmul.f32 14.285714, %v663_v6  ;;  %v738_v9 = vsel %vm696_vm4, %v687_v5, -inf }
 0x368   :  { %739 = vmax.xlane.f32.xlu0 %v738_v9  ;;  %v858_v10 = vpop.f32.mrf.mxu1 }
 0x369   :  { %v861_v11 = vmul.f32 14.285714, %v858_v10  ;;  %v700_v12 = vsel %vm696_vm4, %v666_v8, -inf }
 0x36a   :  { %701 = vmax.xlane.f32.xlu1 %v700_v12 }
 0x36b   :  { %v862_v14 = vsel %vm564_vm2, -1e+09, %v861_v11 }
 0x36c   :  { %v949_v18 = vsel %vm696_vm4, %v862_v14, -inf  ;;  %v901_v21 = vpop.f32.mrf.mxu3 }
 0x36d   :  { %v904_v22 = vmul.f32 14.285714, %v901_v21 }
 0x36e   :  { %v880_v15 = vpop.f32.mrf.mxu2 }
 0x36f   :  { %v883_v17 = vmul.f32 14.285714, %v880_v15  ;;  %v952_v23 = vsel %vm696_vm4, %v904_v22, -inf }
 0x370   :  { %950 = vmax.xlane.f32.xlu0 %v949_v18 }
 0x371   :  { %v915_v19 = vsel %vm696_vm4, %v883_v17, -inf }
 0x372   :  { %916 = vmax.xlane.f32.xlu2 %v915_v19  ;;  %913 = vmax.xlane.f32.xlu1 %v912_v20 }
 0x37a   :  { %953 = vmax.xlane.f32.xlu1 %v952_v23 }
 0x3d2   :  { %v699_v24 = vpop.xlane.xlu0 %698 }
 0x3d8   :  { %v737_v25 = vpop.xlane.xlu2 %736 }
 0x3db   :  { %v740_v26 = vpop.xlane.xlu0 %739 }
 0x3dc   :  { %v1875_v27 = vmax.f32 %v737_v25, %v740_v26 }
 0x3dd   :  { %v702_v28 = vpop.xlane.xlu1 %701 }
 0x3de   :  { %v742_v29 = vsub.f32 %v645_v2, %v1875_v27  ;;  %v1878_v30 = vmax.f32 %v699_v24, %v702_v28  ;;  %v748_v34 = vsub.f32 %v687_v5, %v1875_v27  ;;  %v692_v5 = vsel %vm566_vm3, %v1861_v56, 0.0 }
 0x3df   :  { %vm724_vm3 = vcmask 1024  }
 0x3e0   :  { %v743_v31 = vmul.f32 1.442695, %v742_v29  ;;  %v704_v32 = vsub.f32 %v623_v62, %v1878_v30  ;;  %v710_v33 = vsub.f32 %v666_v8, %v1878_v30  ;;  %v749_v39 = vmul.f32 1.442695, %v748_v34 }
 0x3e2   :  { %1356 = vpow2.f32 %v743_v31  ;;  %v705_v35 = vmul.f32 1.442695, %v704_v32  ;;  %v711_v36 = vmul.f32 1.442695, %v710_v33 }
 0x3e3   :  { %v951_v51 = vpop.xlane.xlu0 %950 }
 0x3e4   :  { %1358 = vpow2.f32 %v705_v35 }
 0x3e5   :  { %1360 = vpow2.f32 %v711_v36  ;;  %v917_v37 = vpop.xlane.xlu2 %916  ;;  %v914_v38 = vpop.xlane.xlu1 %913 }
 0x3e6   :  { %v1883_v40 = vmax.f32 %v914_v38, %v917_v37  ;;  %1362 = vpow2.f32 %v749_v39 }
 0x3e8   :  { %v1357_v41 = vpop.eup %1356  ;;  %v919_v42 = vsub.f32 %v837_v16, %v1883_v40  ;;  %v925_v53 = vsub.f32 %v883_v17, %v1883_v40 }
 0x3e9   :  { %v745_v43 = vsel %vm696_vm4, %v1357_v41, 0.0 }
 0x3ea   :  { %v1359_v44 = vpop.eup %1358  ;;  %v920_v45 = vmul.f32 1.442695, %v919_v42  ;;  %v926_v46 = vmul.f32 1.442695, %v925_v53  ;;  %746 = vadd.xlane.f32.xlu1 %v745_v43 }
 0x3eb   :  { %v1361_v47 = vpop.eup %1360  ;;  %v707_v48 = vsel %vm696_vm4, %v1359_v44, 0.0  ;;  %v1396_v44 = vmov 4.0  }
 0x3ec   :  { %1364 = vpow2.f32 %v920_v45  ;;  %v713_v49 = vsel %vm696_vm4, %v1361_v47, 0.0  ;;  %708 = vadd.xlane.f32.xlu2 %v707_v48  ;;  %v1363_v55 = vpop.eup %1362 }
 0x3ed   :  { %1366 = vpow2.f32 %v926_v46  ;;  %714 = vadd.xlane.f32.xlu0 %v713_v49  ;;  %v954_v52 = vpop.xlane.xlu1 %953  ;;  %v751_v0 = vsel %vm696_vm4, %v1363_v55, 0.0 }
 0x3ee   :  { %v1890_v54 = vmax.f32 %v951_v51, %v954_v52 }
 0x3f0   :  { %v956_v57 = vsub.f32 %v862_v14, %v1890_v54  ;;  %v962_v58 = vsub.f32 %v904_v22, %v1890_v54 }
 0x3f2   :  { %v1365_v59 = vpop.eup %1364  ;;  %v957_v60 = vmul.f32 1.442695, %v956_v57  ;;  %v963_v61 = vmul.f32 1.442695, %v962_v58 }
 0x3f3   :  { %v1367_v62 = vpop.eup %1366  ;;  %v922_v63 = vsel %vm696_vm4, %v1365_v59, 0.0 }
 0x3f4   :  { %1368 = vpow2.f32 %v957_v60  ;;  %752 = vadd.xlane.f32.xlu2 %v751_v0  ;;  %v928_v1 = vsel %vm696_vm4, %v1367_v62, 0.0 }
 0x3f5   :  { %1370 = vpow2.f32 %v963_v61  ;;  %923 = vadd.xlane.f32.xlu0 %v922_v63  ;;  %929 = vadd.xlane.f32.xlu1 %v928_v1 }
 0x3fa   :  { %v1369_v2 = vpop.eup %1368 }
 0x3fb   :  { %v1371_v3 = vpop.eup %1370  ;;  %v959_v4 = vsel %vm696_vm4, %v1369_v2, 0.0 }
 0x3fc   :  { %v965_v6 = vsel %vm696_vm4, %v1371_v3, 0.0  ;;  %960 = vadd.xlane.f32.xlu2 %v959_v4 }
 0x3fd   :  { %693 = vadd.xlane.f32.xlu1 %v692_v5  ;;  %966 = vadd.xlane.f32.xlu0 %v965_v6 }
 0x404   :  { %909 = vadd.xlane.f32.xlu2 %v908_v7 }
 0x45d   :  { %v747_v9 = vpop.xlane.xlu1 %746 }
 0x45f   :  { %v709_v8 = vpop.xlane.xlu2 %708 }
 0x460   :  { %v715_v10 = vpop.xlane.xlu0 %714 }
 0x461   :  { %v716_v11 = vadd.f32 %v715_v10, %v709_v8 }
 0x463   :  { %1372 = vlog2.f32 %v716_v11 }
 0x467   :  { %v753_v12 = vpop.xlane.xlu2 %752 }
 0x468   :  { %v754_v13 = vadd.f32 %v753_v12, %v747_v9  ;;  %v930_v14 = vpop.xlane.xlu1 %929  ;;  %v924_v15 = vpop.xlane.xlu0 %923 }
 0x469   :  { %v931_v16 = vadd.f32 %v930_v14, %v924_v15  ;;  %v1373_v56 = vpop.eup %1372 }
 0x46a   :  { %1374 = vlog2.f32 %v754_v13  ;;  %v718_v17 = vmul.f32 0.6931472, %v1373_v56 }
 0x46b   :  { %1376 = vlog2.f32 %v931_v16 }
 0x46c   :  { %v719_v26 = vadd.f32 %v718_v17, %v1878_v30 }
 0x46f   :  { %v961_v18 = vpop.xlane.xlu2 %960 }
 0x470   :  { %v1375_v19 = vpop.eup %1374  ;;  %v694_v20 = vpop.xlane.xlu1 %693 }
 0x471   :  { %v967_v21 = vpop.xlane.xlu0 %966  ;;  %v756_v50 = vmul.f32 0.6931472, %v1375_v19  ;;  %v695_v22 = vmul.f32 14.285714, %v694_v20  ;;  %v1377_v24 = vpop.eup %1376 }
 0x472   :  { %v968_v23 = vadd.f32 %v967_v21, %v961_v18  ;;  %v933_v32 = vmul.f32 0.6931472, %v1377_v24 }
 0x473   :  { %v721_v25 = vrot.slane %v695_v22, 2  ;;  %v757_v28 = vadd.f32 %v756_v50, %v1875_v27 }
 0x474   :  { %1378 = vlog2.f32 %v968_v23  ;;  %v934_v41 = vadd.f32 %v933_v32, %v1883_v40 }
 0x475   :  { %v723_v29 = vsub.f32 %v719_v26, %v721_v25  ;;  %v758_v31 = vsub.f32 %v757_v28, %v721_v25  ;;  %1380 = vrcp.f32 %v1396_v44 }
 0x477   :  { %v910_v33 = vpop.xlane.xlu2 %909  ;;  %v725_v34 = vsel %vm724_vm3, %v723_v29, 0.0  ;;  %v759_v35 = vsel %vm724_vm3, %v758_v31, 0.0 }
 0x478   :  { %v911_v36 = vmul.f32 14.285714, %v910_v33  ;;  %726 = vadd.xlane.f32.xlu0 %v725_v34  ;;  %760 = vadd.xlane.f32.xlu1 %v759_v35 }
 0x47a   :  { %v1379_v37 = vpop.eup %1378  ;;  %v936_v39 = vrot.slane %v911_v36, 2 }
 0x47b   :  { %v970_v38 = vmul.f32 0.6931472, %v1379_v37  ;;  %v1381_v45 = vpop.eup %1380 }
 0x47c   :  { %v938_v30 = vsub.f32 %v934_v41, %v936_v39  ;;  %v771_v46 = vmul.f32 4.0, %v1381_v45  ;;  %vm775_vm5 = vweird.f32 %v1381_v45 }
 0x47d   :  { %v971_v27 = vadd.f32 %v970_v38, %v1890_v54 }
 0x47e   :  { %v939_v42 = vsel %vm724_vm3, %v938_v30, 0.0  ;;  %v772_v49 = vsub.f32 1.0, %v771_v46 }
 0x47f   :  { %v972_v53 = vsub.f32 %v971_v27, %v936_v39  ;;  %940 = vadd.xlane.f32.xlu2 %v939_v42 }
 0x480   :  { %v773_v57 = vmul.f32 %v1381_v45, %v772_v49 }
 0x481   :  { %v973_v43 = vsel %vm724_vm3, %v972_v53, 0.0 }
 0x482   :  { %974 = vadd.xlane.f32.xlu0 %v973_v43  ;;  %v774_v63 = vadd.f32 %v1381_v45, %v773_v57 }
 0x484   :  { %v776_v9 = vsel %vm775_vm5, %v1381_v45, %v774_v63 }
 0x4eb   :  { %v727_v47 = vpop.xlane.xlu0 %726  ;;  %v761_v48 = vpop.xlane.xlu1 %760 }
 0x4ec   :  { %v728_v51 = vrot.slane %v727_v47, 4  ;;  %v762_v52 = vrot.slane %v761_v48, 4 }
 0x4ee   :  { %v729_v40 = vadd.f32 %v728_v51, %v727_v47  ;;  %v763_v55 = vadd.f32 %v762_v52, %v761_v48 }
 0x4f0   :  { %v730_v54 = vrot.slane %v729_v40, 2  ;;  %v764_v58 = vrot.slane %v763_v55, 2 }
 0x4f2   :  { %v765_v59 = vadd.f32 %v764_v58, %v763_v55  ;;  %v941_v60 = vpop.xlane.xlu2 %940  ;;  %v731_v61 = vadd.f32 %v730_v54, %v729_v40 }
 0x4f3   :  { %v942_v62 = vrot.slane %v941_v60, 4 }
 0x4f4   :  { %v732_v1 = vrot.slane %v731_v61, 1  ;;  %v766_v2 = vrot.slane %v765_v59, 1 }
 0x4f5   :  { %v975_v0 = vpop.xlane.xlu0 %974  ;;  %v943_v3 = vadd.f32 %v942_v62, %v941_v60 }
 0x4f6   :  { %v976_v4 = vrot.slane %v975_v0, 4  ;;  %v733_v5 = vadd.f32 %v732_v1, %v731_v61  ;;  %v767_v6 = vadd.f32 %v766_v2, %v765_v59 }
 0x4f7   :  { %v944_v7 = vrot.slane %v943_v3, 2 }
 0x4f8   :  { %v977_v8 = vadd.f32 %v976_v4, %v975_v0  ;;  %1334 = vpush %v733_v5 }
 0x4f9   :  { %v945_v10 = vadd.f32 %v944_v7, %v943_v3  ;;  %1336 = vpush %v767_v6 }
 0x4fa   :  { %v978_v11 = vrot.slane %v977_v8, 2  ;;  %1338 = vpush %v776_v9 }
 0x4fb   :  { %v946_v13 = vrot.slane %v945_v10, 1 }
 0x4fc   :  { %v979_v12 = vadd.f32 %v978_v11, %v977_v8 }
 0x4fd   :  { %v947_v14 = vadd.f32 %v946_v13, %v945_v10 }
 0x4fe   :  { %v980_v15 = vrot.slane %v979_v12, 1 }
 0x4ff   :  { %1340 = vpush %v947_v14 }
 0x500   :  { %v981_v16 = vadd.f32 %v980_v15, %v979_v12 }
 0x502   :  { %1342 = vpush %v981_v16 }
 0x529   :  { %s1335_s2 = spop %1334 }
 0x52a   :  { %s1337_s13 = spop %1336 }
 0x52b   :  { %s769_s1 = sadd.f32 %s1337_s13, %s1335_s2  ;;  %s1339_s14 = spop %1338 }
 0x52d   :  { %s778_s15 = smul.f32 %s1339_s14, %s769_s1 }
 0x52f   :  { %780 = sst [smem:[#allocation2]] %s778_s15 }
 0x530   :  { %s1341_s16 = spop %1340 }
 0x533   :  { %s1343_s17 = spop %1342 }
 0x534   :  { %s983_s21 = sadd.f32 %s1343_s17, %s1341_s16 }
 0x536   :  { %s992_s22 = smul.f32 %s1339_s14, %s983_s21 }
 0x538   :  { %994 = sst [smem:[#allocation2 + $0x1]] %s992_s22 }
 0x539   :  { %1003 = dma.smem_to_vmem %s1397_s23, 16, %s1001_s20, [#allocation3]  }
 0x53a   :  { %1394 = dma.done.wait [#allocation3], 16  }
 0x53b   :  { %1395 = vsyncadd [#allocation3], 4294967280 }
 0x53c   :  { %1008 = sfence }
 0x53d   :  { %1009 = vsyncpa [#allocation3], 1 }

</bundles_post_ra>
